<compile_context>
chip_gen: v7x
topology: tpu7x:2x2x1
jax: 0.10.0
libtpu: 0.0.40
codegen_flags: <defaults>
</compile_context>

<pallas_src>
import functools
import math
import numpy as np
import jax
import jax.numpy as jnp
from jax.experimental import pallas as pl
from jax.experimental.pallas import tpu as pltpu


# ----------------------------------------------------------------------------
# Basis construction (deterministic numpy re-implementation of e2cnn defaults).
# ----------------------------------------------------------------------------
def e2cnn_basis(kernel_size, inp_rot, out_rot):
    n_rings = math.ceil(kernel_size / 2)
    rings = np.linspace(0.0, (kernel_size - 1) // 2, n_rings)
    sigma = [0.6] * (n_rings - 1) + [0.4]
    sigma = [0.005 if r == 0.0 else s for r, s in zip(rings, sigma)]
    max_radius = kernel_size // 2

    # TODO(synk): band-limit rule re-implements e2cnn's default _manual_fco1;
    # verify against e2cnn if exact basis parity with a given install is needed.
    def fco(r):
        if r == 0.0:
            return 0.0
        return min(2.0 * r, 2.0 * max_radius - (r + max_radius + 1) % 2)

    max_f = int(max(fco(float(r)) for r in rings))
    freqs = np.unique(out_rot[:, None] - inp_rot[None, :])
    basis = [(float(r), float(s), float(f))
             for r, s in zip(rings, sigma)
             for f in freqs
             if abs(f) <= max_f and abs(f) <= fco(float(r))]
    radius = np.array([b[0] for b in basis], np.float32)
    sig = np.array([b[1] for b in basis], np.float32)
    frequency = np.array([b[2] for b in basis], np.float32)
    return radius, sig, frequency


# ----------------------------------------------------------------------------
# Parameter / constant initialization (mirrors FlexChannelPConv2D.__init__).
# Produces a single fused, transposed real weight matrix W_all_T (2C_out, F*2C_pad)
# such that out_T = W_all_T @ [t_0; ...; t_{F-1}] with t_f = data_T @ filter_f.
# pre_mul, weight connectivity and the "imag=0 where out_rot==0" rule are all
# folded into W_all_T at init time.
# ----------------------------------------------------------------------------
def init_pconv2d(key, ch_inp, ch_out, k_inp, k_out, size):
    inp_rot = np.tile(np.arange(k_inp + 1), ch_inp)          # (C,)
    out_rot = np.tile(np.arange(k_out + 1), ch_out)          # (C_out,)
    basis_out_rot = np.concatenate([out_rot, -out_rot])
    radius, sigma, frequency = e2cnn_basis(size, inp_rot, basis_out_rot)
    F = radius.shape[0]
    C = inp_rot.shape[0]
    C_out = out_rot.shape[0]

    # meshgrid(inp_rot, frequency) flattened -> inp_rot slow, frequency fast
    pre_inp_rot = np.repeat(inp_rot.astype(np.float32), F)
    pre_flt_rot = np.tile(frequency, C)
    pre_out_rot = pre_inp_rot + pre_flt_rot
    pre_mul = np.stack([np.ones_like(pre_out_rot), np.sign(pre_out_rot + 0.5)], -1)
    m0 = pre_inp_rot == 0
    pre_mul[m0] *= 0.5 * (np.sign(pre_out_rot[m0])[:, None] + 1)
    pre_mul[pre_out_rot == 0] *= 2
    pre_out_abs = np.abs(pre_out_rot)
    wc = pre_out_abs[:, None] == out_rot[None, :].astype(np.float32)   # (C*F, C_out)
    pre_cut = np.any(pre_mul != 0, axis=1) & np.any(wc, axis=1)
    keep_idx = np.where(pre_cut)[0]
    pre_mul_cut = pre_mul[keep_idx]
    wc_cut = wc[keep_idx]
    n_w = int(wc_cut.sum())

    weights = np.asarray(
        jax.random.normal(key, (n_w, 2), dtype=jnp.float32)) * np.float32((2.0 / n_w) ** 0.5)

    # scatter trainable weights into full (C*F, C_out, 2); cut rows stay zero,
    # which keeps the full-size contraction identical to the sliced reference.
    w_cut_full = np.zeros((keep_idx.shape[0], C_out, 2), np.float32)
    w_cut_full[wc_cut] = weights
    w_full = np.zeros((C * F, C_out, 2), np.float32)
    w_full[keep_idx] = w_cut_full
    pm_full = np.zeros((C * F, 2), np.float32)
    pm_full[keep_idx] = pre_mul_cut

    imag_mask = (out_rot != 0).astype(np.float32)[None, :]   # imag forced to 0 where out_rot==0
    A = pm_full[:, 0:1] * w_full[..., 0]
    Bm = pm_full[:, 1:2] * w_full[..., 1]
    Cm = pm_full[:, 0:1] * w_full[..., 1] * imag_mask
    Dm = pm_full[:, 1:2] * w_full[..., 0] * imag_mask

    # rows are flattened as (c, f) in the reference; regroup per basis fn f.
    perm = np.arange(C * F).reshape(C, F).T.reshape(-1)
    A_f, B_f, C_f, D_f = (M[perm].reshape(F, C, C_out) for M in (A, Bm, Cm, Dm))

    # per-basis packed real weights:  [tr | ti] @ [[A, C], [-B, D]] = [out_r | out_i]
    top = np.concatenate([A_f, C_f], axis=2)      # multiplies tr
    bot = np.concatenate([-B_f, D_f], axis=2)     # multiplies ti
    w_pack = np.concatenate([top, bot], axis=1)   # (F, 2C, 2C_out)

    # fused, transposed weights for the single output matmul:
    #   out_T (2C_out, tq) = W_all_T @ t_all,  t_all rows f*2C_pad : f*2C_pad+2C = t_f
    c2 = 2 * C
    c2_pad = ((c2 + 7) // 8) * 8                  # sublane-aligned per-basis slab
    w_pad = np.zeros((F, c2_pad, 2 * C_out), np.float32)
    w_pad[:, :c2, :] = w_pack
    w_all_T = np.ascontiguousarray(
        np.transpose(w_pad, (2, 0, 1)).reshape(2 * C_out, F * c2_pad))

    # per-basis-fn metadata for the in-kernel base-cache lookups
    ring_r0, ring_first = np.unique(radius, return_index=True)
    ring_sigma = sigma[ring_first]
    ring_idx = np.searchsorted(ring_r0, radius).astype(np.int32)
    freq_abs = np.abs(frequency).astype(np.int32)
    freq_sign = np.where(frequency < 0, -1.0, 1.0).astype(np.float32)

    params = dict(
        W=jnp.asarray(w_all_T),
        ring_idx=jnp.asarray(ring_idx),
        freq_abs=jnp.asarray(freq_abs),
        freq_sign=jnp.asarray(freq_sign),
        ring_r0=tuple(float(x) for x in ring_r0),
        ring_inv=tuple(float(1.0 / (math.sqrt(2.0) * float(s))) for s in ring_sigma),
        n_basis=int(F),
        n_freqs=int(freq_abs.max()) + 1,
        c2_pad=int(c2_pad),
        out_shape=(ch_out, k_out + 1))
    ref = dict(radius=radius, sigma=sigma, frequency=frequency,
               pre_mul_cut=pre_mul_cut, wc_cut=wc_cut, keep_idx=keep_idx,
               weights=weights, out_rot=out_rot)
    return params, ref


# ----------------------------------------------------------------------------
# Fused Pallas kernel: per-q-tile base cache (env per ring, cos/sin(k*theta) by
# recurrence) + per-basis bf16 P-contraction into a t_all buffer + ONE fused
# f32 weight matmul with a lane-dense output store.
# ----------------------------------------------------------------------------
def _pconv2d_fused_kernel(ring_idx_ref, freq_abs_ref, freq_sign_ref,
                          geom_ref, data_ref, w_ref, out_ref,
                          env_ref, cos_ref, sin_ref, filt_ref, t_ref,
                          *, n_basis, n_freqs, ring_r0, ring_inv, c2_pad, n_points):
    b = pl.program_id(1)

    # ---- base cache: built once per q-tile (b == 0), reused for b > 0 --------
    # Valid because the batch axis is the innermost, sequential ("arbitrary")
    # grid axis; do NOT reorder the grid or mark the batch axis "parallel".
    @pl.when(b == 0)
    def _build_base_cache():
        rad = geom_ref[0]                                   # (P, tq) f32
        ang = geom_ref[1]
        nz = (rad != 0.0).astype(jnp.float32)               # f-independent mask, hoisted
        # exp() once per ring (n_rings << n_basis)
        for r in range(len(ring_r0)):
            z = (rad - ring_r0[r]) * ring_inv[r]
            env_ref[r] = jnp.exp(-(z * z))
        # cos/sin(k*theta) via angle-addition recurrence; the (radius != 0) mask
        # is folded in for k >= 1 (for k == 0 the reference keeps every point).
        cos_ref[0] = jnp.ones_like(rad)
        sin_ref[0] = jnp.zeros_like(rad)
        if n_freqs > 1:
            c1 = jnp.cos(ang)
            s1 = jnp.sin(ang)
            ck, sk = c1, s1
            for k in range(1, n_freqs):
                cos_ref[k] = ck * nz
                sin_ref[k] = sk * nz
                if k + 1 < n_freqs:
                    ck, sk = ck * c1 - sk * s1, sk * c1 + ck * s1

    data_b = data_ref[b]                                    # (2C_pad, 2P) bf16, resident

    # ---- per-basis contraction over P (bf16 MXU operands, f32 accumulation) --
    def accum(f, carry):
        env = env_ref[ring_idx_ref[f]]                      # (P, tq) f32
        k = freq_abs_ref[f]
        sgn = freq_sign_ref[f]                              # sign(frequency)
        # packed filter [Re ; Im] written straight into the (2P, tq) scratch
        filt_ref[:n_points, :] = (env * cos_ref[k]).astype(jnp.bfloat16)
        filt_ref[n_points:, :] = (env * (sgn * sin_ref[k])).astype(jnp.bfloat16)
        t = jnp.dot(data_b, filt_ref[...], preferred_element_type=jnp.float32)
        off = pl.multiple_of(f * c2_pad, 8)                 # aligned slab write
        t_ref[pl.ds(off, c2_pad), :] = t
        return carry

    jax.lax.fori_loop(0, n_basis, accum, 0)                 # not unrolled (F can be 20-40)

    # ---- single fused weight matmul + lane-dense output store ----------------
    out_ref[0] = jnp.dot(w_ref[...], t_ref[...], preferred_element_type=jnp.float32)


def _pick_q_tile(Q, per_col_bytes, avail_bytes, min_q_tiles=2):
    """Largest q tile that (a) satisfies the lane-tiling rule (multiple of 128 or
    equal to Q), (b) fits the VMEM budget, and (c) when possible leaves at least
    `min_q_tiles` tiles so both v7x TensorCores get work on the 'parallel' axis."""
    if Q % 128 != 0:
        # TODO(synk): pad Q up to a multiple of 128 to enable lane tiling here.
        return Q
    cands = [t for t in range(128, Q + 1, 128) if Q % t == 0]
    fitting = [t for t in cands if t * per_col_bytes <= avail_bytes] or [128]
    multi = [t for t in fitting if Q // t >= min_q_tiles]
    return max(multi) if multi else max(fitting)


def pconv2d_fused(params, geom, data_t, *, vmem_budget=56 << 20):
    """Fused steerable-filter construction + complex contraction.

    vmem_budget defaults to 56 MiB so the kernel fits v7x's 64 MiB VMEM; on
    v5e / v6e (128 MiB VMEM) it can be raised to ~100 MiB for larger q tiles.
    """
    n_basis = params["n_basis"]
    n_freqs = params["n_freqs"]
    n_rings = len(params["ring_r0"])
    c2_pad = params["c2_pad"]
    B, _, two_p = data_t.shape
    P = two_p // 2
    Q = geom.shape[2]
    c2_out = params["W"].shape[0]
    c2_out_pad = ((c2_out + 7) // 8) * 8

    # Padded per-tq-column VMEM bytes (the lane dim is tq in every block below):
    per_col = (2 * 2 * P * 4             # geometry block, double-buffered, f32
               + n_rings * P * 4         # ring-envelope cache
               + 2 * n_freqs * P * 4     # masked cos/sin caches
               + two_p * 2               # synthesized bf16 packed filter
               + n_basis * c2_pad * 4    # t_all contraction buffer (all basis fns)
               + 2 * c2_out_pad * 4)     # output block, double-buffered
    fixed = (2 * B * c2_pad * two_p * 2                           # resident bf16 data
             + 2 * c2_out_pad * max(128, n_basis * c2_pad) * 4    # resident weights
             + (2 << 20))                                         # compiler headroom
    tq = _pick_q_tile(Q, per_col, vmem_budget - fixed)
    vmem_limit = int(min(max(vmem_budget, fixed + tq * per_col), 120 << 20))

    kernel = functools.partial(
        _pconv2d_fused_kernel,
        n_basis=n_basis, n_freqs=n_freqs, ring_r0=params["ring_r0"],
        ring_inv=params["ring_inv"], c2_pad=c2_pad, n_points=P)
    smem = pl.BlockSpec(memory_space=pltpu.MemorySpace.SMEM)

    return pl.pallas_call(
        kernel,
        out_shape=jax.ShapeDtypeStruct((B, c2_out, Q), jnp.float32),
        grid=(Q // tq, B),
        in_specs=[
            smem, smem, smem,                                           # ring idx / |freq| / sign(freq)
            pl.BlockSpec((2, P, tq), lambda qi, b: (0, 0, qi)),         # geometry, q on lanes
            pl.BlockSpec((B, c2_pad, two_p), lambda qi, b: (0, 0, 0)),  # packed bf16 data, resident
            pl.BlockSpec((c2_out, n_basis * c2_pad), lambda qi, b: (0, 0)),  # fused weights, resident
        ],
        out_specs=pl.BlockSpec((1, c2_out, tq), lambda qi, b: (b, 0, qi)),   # lane-dense output
        scratch_shapes=[
            pltpu.VMEM((n_rings, P, tq), jnp.float32),        # env per ring
            pltpu.VMEM((n_freqs, P, tq), jnp.float32),        # cos(k*theta) * mask
            pltpu.VMEM((n_freqs, P, tq), jnp.float32),        # sin(k*theta) * mask
            pltpu.VMEM((two_p, tq), jnp.bfloat16),            # synthesized packed filter
            pltpu.VMEM((n_basis * c2_pad, tq), jnp.float32),  # t_all
        ],
        compiler_params=pltpu.CompilerParams(
            dimension_semantics=("parallel", "arbitrary"),
            vmem_limit_bytes=vmem_limit),
    )(params["ring_idx"], params["freq_abs"], params["freq_sign"],
      geom, data_t, params["W"])


# ----------------------------------------------------------------------------
# Full forward (mirrors PConv2D.forward / FlexChannelPConv2D.forward, unpad=0).
# ----------------------------------------------------------------------------
def pconv2d_forward(params, data, inp_grid):
    ch_out, kdim = params["out_shape"]
    c2_pad = params["c2_pad"]
    B, P = data.shape[0], data.shape[1]
    data2 = data.reshape(B, P, -1)                        # flatten(2,3) -> (B, P, C)
    C = data2.shape[-1]
    dr = jnp.real(data2).astype(jnp.float32)
    di = jnp.imag(data2).astype(jnp.float32)
    dr_t = jnp.swapaxes(dr, 1, 2)                         # (B, C, P)
    di_t = jnp.swapaxes(di, 1, 2)
    # transposed real-packed complex operand (lane-dense: 2P on lanes):
    #   [[dr^T, -di^T], [di^T, dr^T]] -> (B, 2C, 2P), zero-padded to 2C_pad rows
    data_t = jnp.concatenate(
        [jnp.concatenate([dr_t, -di_t], axis=-1),
         jnp.concatenate([di_t, dr_t], axis=-1)], axis=1)
    if c2_pad > 2 * C:
        data_t = jnp.pad(data_t, ((0, 0), (0, c2_pad - 2 * C), (0, 0)))
    data_t = data_t.astype(jnp.bfloat16)

    out_grid = inp_grid                                   # unpad == 0
    inp_flat = inp_grid.reshape(2, -1)                    # (2, P)
    out_flat = out_grid.reshape(2, -1)                    # (2, Q)
    # coords[d, p, q] = inp[d, p] - out[d, q]   (q on the lane axis)
    d0 = inp_flat[0][:, None] - out_flat[0][None, :]
    d1 = inp_flat[1][:, None] - out_flat[1][None, :]
    rad = jnp.sqrt(d0 * d0 + d1 * d1)
    ang = jnp.arctan2(d0, d1)
    geom = jnp.stack([rad, ang], axis=0)                  # (2, P, Q)

    out_packed = pconv2d_fused(params, geom, data_t)      # (B, 2*C_out, Q)
    c_out = params["W"].shape[0] // 2
    out_c = jax.lax.complex(out_packed[:, :c_out, :], out_packed[:, c_out:, :])
    out = jnp.swapaxes(out_c, 1, 2).astype(jnp.complex64) # (B, Q, C_out)
    out = out.reshape(B, out.shape[1], ch_out, kdim)
    return out, out_grid


# ----------------------------------------------------------------------------
# Pure-JAX reference (direct transcription of the PyTorch forward), computed
# at HIGHEST matmul precision to serve as the gold standard.
# ----------------------------------------------------------------------------
def reference_forward(ref, out_shape, data, inp_grid):
    hp = jax.lax.Precision.HIGHEST
    R = jnp.asarray(ref["radius"]); S = jnp.asarray(ref["sigma"]); Fq = jnp.asarray(ref["frequency"])
    B = data.shape[0]
    data2 = data.reshape(B, data.shape[1], -1).astype(jnp.complex64)
    out_grid = inp_grid
    coords = (inp_grid.reshape(2, -1)[:, :, None] - out_grid.reshape(2, -1)[:, None, :])[..., None]
    radius = jnp.sqrt(jnp.sum(coords ** 2, axis=0))        # (P, Q, 1)
    angles = jnp.arctan2(coords[0], coords[1])
    pre_filter = jnp.exp(-((radius - R) / (2 ** 0.5 * S)) ** 2 + 1j * (angles * Fq))
    pre_filter = pre_filter * ((radius != 0) | (Fq == 0))
    pp = jnp.einsum("bpc,pqf->bqcf", data2, pre_filter, precision=hp)
    Q = pp.shape[1]
    pp = pp.reshape(B, Q, -1)
    ppr = jnp.stack([jnp.real(pp), jnp.imag(pp)], -1)
    ppr = ppr[:, :, ref["keep_idx"], :] * jnp.asarray(ref["pre_mul_cut"])
    pp_c = ppr[..., 0] + 1j * ppr[..., 1]
    w_cut = np.zeros(ref["wc_cut"].shape + (2,), np.float32)
    w_cut[ref["wc_cut"]] = ref["weights"]
    Wc = jnp.asarray(w_cut[..., 0] + 1j * w_cut[..., 1])
    out = jnp.einsum("bpf,fc->bpc", pp_c, Wc, precision=hp)
    zero_imag = jnp.asarray(ref["out_rot"] == 0)
    out = jnp.where(zero_imag[None, None, :], jnp.real(out).astype(out.dtype), out)
    return out.reshape(B, Q, *out_shape)


if __name__ == "__main__":
    ch_inp, ch_out, k_inp, k_out, size = 2, 3, 1, 2, 5
    H = W = 8
    B = 2
    P = H * W

    key = jax.random.PRNGKey(0)
    kw, kd1, kd2 = jax.random.split(key, 3)
    params, ref = init_pconv2d(kw, ch_inp, ch_out, k_inp, k_out, size)

    data = jax.lax.complex(
        jax.random.normal(kd1, (B, P, ch_inp, k_inp + 1), dtype=jnp.float32),
        jax.random.normal(kd2, (B, P, ch_inp, k_inp + 1), dtype=jnp.float32),
    ).astype(jnp.complex64)
    gy, gx = jnp.meshgrid(jnp.arange(H, dtype=jnp.float32),
                          jnp.arange(W, dtype=jnp.float32), indexing="ij")
    inp_grid = jnp.stack([gy, gx], axis=0)                 # (2, H, W)

    out, out_grid = pconv2d_forward(params, data, inp_grid)
    out = jax.block_until_ready(out)

    out_ref = reference_forward(ref, params["out_shape"], data, inp_grid)
    err = float(jnp.max(jnp.abs(out - out_ref)))
    scale = float(jnp.max(jnp.abs(out_ref))) + 1e-6
    assert err <= 2e-2 * scale + 2e-3, f"mismatch: max_err={err}, scale={scale}"
    assert out.shape == (B, P, ch_out, k_out + 1) and out.dtype == jnp.complex64

    print("KERNEL_OK")
</pallas_src>

<mosaic_0001>
module attributes {stable_mosaic.version = 11 : i64} {
  func.func @_pconv2d_fused_kernel(%arg0: i32, %arg1: i32, %arg2: memref<12xi32, #tpu.memory_space<smem>>, %arg3: memref<12xi32, #tpu.memory_space<smem>>, %arg4: memref<12xf32, #tpu.memory_space<smem>>, %arg5: memref<2x64x64xf32, #tpu.memory_space<vmem>>, %arg6: memref<2x8x128xbf16, #tpu.memory_space<vmem>>, %arg7: memref<18x96xf32, #tpu.memory_space<vmem>>, %arg8: memref<1x18x64xf32, #tpu.memory_space<vmem>>, %arg9: memref<3x64x64xf32, #tpu.memory_space<vmem>>, %arg10: memref<4x64x64xf32, #tpu.memory_space<vmem>>, %arg11: memref<4x64x64xf32, #tpu.memory_space<vmem>>, %arg12: memref<128x64xbf16, #tpu.memory_space<vmem>>, %arg13: memref<96x64xf32, #tpu.memory_space<vmem>>) attributes {dimension_semantics = [#tpu.dimension_semantics<parallel>, #tpu.dimension_semantics<arbitrary>], iteration_bounds = array<i64: 1, 2>, scalar_prefetch = 0 : i64, scratch_operands = 5 : i64, tpu.core_type = #tpu.core_type<tc>, window_params = [{transform_indices = @transform_0, window_bounds = array<i64: 12>}, {transform_indices = @transform_1, window_bounds = array<i64: 12>}, {transform_indices = @transform_2, window_bounds = array<i64: 12>}, {transform_indices = @transform_3, window_bounds = array<i64: 2, 64, 64>}, {pipeline_mode = #tpu.pipeline_mode<synchronous>, transform_indices = @transform_4, window_bounds = array<i64: 2, 8, 128>}, {pipeline_mode = #tpu.pipeline_mode<synchronous>, transform_indices = @transform_5, window_bounds = array<i64: 18, 96>}, {transform_indices = @transform_6, window_bounds = array<i64: 1, 18, 64>}]} {
    %c0_i32 = arith.constant 0 : i32
    %0 = arith.cmpi eq, %arg1, %c0_i32 : i32
    %1 = arith.extui %0 : i1 to i32
    %c0_i32_0 = arith.constant 0 : i32
    %2 = arith.cmpi ne, %1, %c0_i32_0 : i32
    scf.if %2 {
      %c0_11 = arith.constant 0 : index
      %c0_12 = arith.constant 0 : index
      %c0_13 = arith.constant 0 : index
      %13 = vector.load %arg5[%c0_11, %c0_12, %c0_13] : memref<2x64x64xf32, #tpu.memory_space<vmem>>, vector<1x64x64xf32>
      %14 = vector.shape_cast %13 : vector<1x64x64xf32> to vector<64x64xf32>
      %c1 = arith.constant 1 : index
      %c0_14 = arith.constant 0 : index
      %c0_15 = arith.constant 0 : index
      %15 = vector.load %arg5[%c1, %c0_14, %c0_15] : memref<2x64x64xf32, #tpu.memory_space<vmem>>, vector<1x64x64xf32>
      %16 = vector.shape_cast %15 : vector<1x64x64xf32> to vector<64x64xf32>
      %cst_16 = arith.constant 0.000000e+00 : f32
      %17 = vector.broadcast %cst_16 : f32 to vector<64x64xf32>
      %18 = arith.cmpf one, %14, %17 : vector<64x64xf32>
      %19 = arith.extui %18 : vector<64x64xi1> to vector<64x64xi32>
      %20 = arith.sitofp %19 : vector<64x64xi32> to vector<64x64xf32>
      %cst_17 = arith.constant 0.000000e+00 : f32
      %21 = vector.broadcast %cst_17 : f32 to vector<64x64xf32>
      %22 = arith.subf %14, %21 : vector<64x64xf32>
      %cst_18 = arith.constant 141.421356 : f32
      %23 = vector.broadcast %cst_18 : f32 to vector<64x64xf32>
      %24 = arith.mulf %22, %23 : vector<64x64xf32>
      %25 = arith.mulf %24, %24 : vector<64x64xf32>
      %cst_19 = arith.constant 0.000000e+00 : f32
      %26 = vector.broadcast %cst_19 : f32 to vector<64x64xf32>
      %27 = arith.subf %26, %25 : vector<64x64xf32>
      %28 = math.exp %27 : vector<64x64xf32>
      %c0_20 = arith.constant 0 : index
      %c0_21 = arith.constant 0 : index
      %c0_22 = arith.constant 0 : index
      %29 = vector.load %arg9[%c0_20, %c0_21, %c0_22] : memref<3x64x64xf32, #tpu.memory_space<vmem>>, vector<1x64x64xf32>
      %30 = vector.shape_cast %29 : vector<1x64x64xf32> to vector<64x64xf32>
      %31 = vector.shape_cast %28 : vector<64x64xf32> to vector<1x64x64xf32>
      tpu.vector_store %arg9[%c0_20, %c0_21, %c0_22], %31 {strides = array<i32>} : memref<3x64x64xf32, #tpu.memory_space<vmem>>, vector<1x64x64xf32>,
      %cst_23 = arith.constant 1.000000e+00 : f32
      %32 = vector.broadcast %cst_23 : f32 to vector<64x64xf32>
      %33 = arith.subf %14, %32 : vector<64x64xf32>
      %cst_24 = arith.constant 1.17851126 : f32
      %34 = vector.broadcast %cst_24 : f32 to vector<64x64xf32>
      %35 = arith.mulf %33, %34 : vector<64x64xf32>
      %36 = arith.mulf %35, %35 : vector<64x64xf32>
      %cst_25 = arith.constant 0.000000e+00 : f32
      %37 = vector.broadcast %cst_25 : f32 to vector<64x64xf32>
      %38 = arith.subf %37, %36 : vector<64x64xf32>
      %39 = math.exp %38 : vector<64x64xf32>
      %c1_26 = arith.constant 1 : index
      %c0_27 = arith.constant 0 : index
      %c0_28 = arith.constant 0 : index
      %40 = vector.load %arg9[%c1_26, %c0_27, %c0_28] : memref<3x64x64xf32, #tpu.memory_space<vmem>>, vector<1x64x64xf32>
      %41 = vector.shape_cast %40 : vector<1x64x64xf32> to vector<64x64xf32>
      %42 = vector.shape_cast %39 : vector<64x64xf32> to vector<1x64x64xf32>
      tpu.vector_store %arg9[%c1_26, %c0_27, %c0_28], %42 {strides = array<i32>} : memref<3x64x64xf32, #tpu.memory_space<vmem>>, vector<1x64x64xf32>,
      %cst_29 = arith.constant 2.000000e+00 : f32
      %43 = vector.broadcast %cst_29 : f32 to vector<64x64xf32>
      %44 = arith.subf %14, %43 : vector<64x64xf32>
      %cst_30 = arith.constant 1.76776695 : f32
      %45 = vector.broadcast %cst_30 : f32 to vector<64x64xf32>
      %46 = arith.mulf %44, %45 : vector<64x64xf32>
      %47 = arith.mulf %46, %46 : vector<64x64xf32>
      %cst_31 = arith.constant 0.000000e+00 : f32
      %48 = vector.broadcast %cst_31 : f32 to vector<64x64xf32>
      %49 = arith.subf %48, %47 : vector<64x64xf32>
      %50 = math.exp %49 : vector<64x64xf32>
      %c2 = arith.constant 2 : index
      %c0_32 = arith.constant 0 : index
      %c0_33 = arith.constant 0 : index
      %51 = vector.load %arg9[%c2, %c0_32, %c0_33] : memref<3x64x64xf32, #tpu.memory_space<vmem>>, vector<1x64x64xf32>
      %52 = vector.shape_cast %51 : vector<1x64x64xf32> to vector<64x64xf32>
      %53 = vector.shape_cast %50 : vector<64x64xf32> to vector<1x64x64xf32>
      tpu.vector_store %arg9[%c2, %c0_32, %c0_33], %53 {strides = array<i32>} : memref<3x64x64xf32, #tpu.memory_space<vmem>>, vector<1x64x64xf32>,
      %cst_34 = arith.constant 1.000000e+00 : f32
      %54 = vector.broadcast %cst_34 : f32 to vector<64x64xf32>
      %c0_35 = arith.constant 0 : index
      %c0_36 = arith.constant 0 : index
      %c0_37 = arith.constant 0 : index
      %55 = vector.load %arg10[%c0_35, %c0_36, %c0_37] : memref<4x64x64xf32, #tpu.memory_space<vmem>>, vector<1x64x64xf32>
      %56 = vector.shape_cast %55 : vector<1x64x64xf32> to vector<64x64xf32>
      %57 = vector.shape_cast %54 : vector<64x64xf32> to vector<1x64x64xf32>
      tpu.vector_store %arg10[%c0_35, %c0_36, %c0_37], %57 {strides = array<i32>} : memref<4x64x64xf32, #tpu.memory_space<vmem>>, vector<1x64x64xf32>,
      %cst_38 = arith.constant 0.000000e+00 : f32
      %58 = vector.broadcast %cst_38 : f32 to vector<64x64xf32>
      %c0_39 = arith.constant 0 : index
      %c0_40 = arith.constant 0 : index
      %c0_41 = arith.constant 0 : index
      %59 = vector.load %arg11[%c0_39, %c0_40, %c0_41] : memref<4x64x64xf32, #tpu.memory_space<vmem>>, vector<1x64x64xf32>
      %60 = vector.shape_cast %59 : vector<1x64x64xf32> to vector<64x64xf32>
      %61 = vector.shape_cast %58 : vector<64x64xf32> to vector<1x64x64xf32>
      tpu.vector_store %arg11[%c0_39, %c0_40, %c0_41], %61 {strides = array<i32>} : memref<4x64x64xf32, #tpu.memory_space<vmem>>, vector<1x64x64xf32>,
      %62 = math.cos %16 : vector<64x64xf32>
      %63 = math.sin %16 : vector<64x64xf32>
      %64 = arith.mulf %62, %20 : vector<64x64xf32>
      %c1_42 = arith.constant 1 : index
      %c0_43 = arith.constant 0 : index
      %c0_44 = arith.constant 0 : index
      %65 = vector.load %arg10[%c1_42, %c0_43, %c0_44] : memref<4x64x64xf32, #tpu.memory_space<vmem>>, vector<1x64x64xf32>
      %66 = vector.shape_cast %65 : vector<1x64x64xf32> to vector<64x64xf32>
      %67 = vector.shape_cast %64 : vector<64x64xf32> to vector<1x64x64xf32>
      tpu.vector_store %arg10[%c1_42, %c0_43, %c0_44], %67 {strides = array<i32>} : memref<4x64x64xf32, #tpu.memory_space<vmem>>, vector<1x64x64xf32>,
      %68 = arith.mulf %63, %20 : vector<64x64xf32>
      %c1_45 = arith.constant 1 : index
      %c0_46 = arith.constant 0 : index
      %c0_47 = arith.constant 0 : index
      %69 = vector.load %arg11[%c1_45, %c0_46, %c0_47] : memref<4x64x64xf32, #tpu.memory_space<vmem>>, vector<1x64x64xf32>
      %70 = vector.shape_cast %69 : vector<1x64x64xf32> to vector<64x64xf32>
      %71 = vector.shape_cast %68 : vector<64x64xf32> to vector<1x64x64xf32>
      tpu.vector_store %arg11[%c1_45, %c0_46, %c0_47], %71 {strides = array<i32>} : memref<4x64x64xf32, #tpu.memory_space<vmem>>, vector<1x64x64xf32>,
      %72 = arith.mulf %62, %62 : vector<64x64xf32>
      %73 = arith.mulf %63, %63 : vector<64x64xf32>
      %74 = arith.subf %72, %73 : vector<64x64xf32>
      %75 = arith.mulf %63, %62 : vector<64x64xf32>
      %76 = arith.mulf %62, %63 : vector<64x64xf32>
      %77 = arith.addf %75, %76 : vector<64x64xf32>
      %78 = arith.mulf %74, %20 : vector<64x64xf32>
      %c2_48 = arith.constant 2 : index
      %c0_49 = arith.constant 0 : index
      %c0_50 = arith.constant 0 : index
      %79 = vector.load %arg10[%c2_48, %c0_49, %c0_50] : memref<4x64x64xf32, #tpu.memory_space<vmem>>, vector<1x64x64xf32>
      %80 = vector.shape_cast %79 : vector<1x64x64xf32> to vector<64x64xf32>
      %81 = vector.shape_cast %78 : vector<64x64xf32> to vector<1x64x64xf32>
      tpu.vector_store %arg10[%c2_48, %c0_49, %c0_50], %81 {strides = array<i32>} : memref<4x64x64xf32, #tpu.memory_space<vmem>>, vector<1x64x64xf32>,
      %82 = arith.mulf %77, %20 : vector<64x64xf32>
      %c2_51 = arith.constant 2 : index
      %c0_52 = arith.constant 0 : index
      %c0_53 = arith.constant 0 : index
      %83 = vector.load %arg11[%c2_51, %c0_52, %c0_53] : memref<4x64x64xf32, #tpu.memory_space<vmem>>, vector<1x64x64xf32>
      %84 = vector.shape_cast %83 : vector<1x64x64xf32> to vector<64x64xf32>
      %85 = vector.shape_cast %82 : vector<64x64xf32> to vector<1x64x64xf32>
      tpu.vector_store %arg11[%c2_51, %c0_52, %c0_53], %85 {strides = array<i32>} : memref<4x64x64xf32, #tpu.memory_space<vmem>>, vector<1x64x64xf32>,
      %86 = arith.mulf %74, %62 : vector<64x64xf32>
      %87 = arith.mulf %77, %63 : vector<64x64xf32>
      %88 = arith.subf %86, %87 : vector<64x64xf32>
      %89 = arith.mulf %77, %62 : vector<64x64xf32>
      %90 = arith.mulf %74, %63 : vector<64x64xf32>
      %91 = arith.addf %89, %90 : vector<64x64xf32>
      %92 = arith.mulf %88, %20 : vector<64x64xf32>
      %c3 = arith.constant 3 : index
      %c0_54 = arith.constant 0 : index
      %c0_55 = arith.constant 0 : index
      %93 = vector.load %arg10[%c3, %c0_54, %c0_55] : memref<4x64x64xf32, #tpu.memory_space<vmem>>, vector<1x64x64xf32>
      %94 = vector.shape_cast %93 : vector<1x64x64xf32> to vector<64x64xf32>
      %95 = vector.shape_cast %92 : vector<64x64xf32> to vector<1x64x64xf32>
      tpu.vector_store %arg10[%c3, %c0_54, %c0_55], %95 {strides = array<i32>} : memref<4x64x64xf32, #tpu.memory_space<vmem>>, vector<1x64x64xf32>,
      %96 = arith.mulf %91, %20 : vector<64x64xf32>
      %c3_56 = arith.constant 3 : index
      %c0_57 = arith.constant 0 : index
      %c0_58 = arith.constant 0 : index
      %97 = vector.load %arg11[%c3_56, %c0_57, %c0_58] : memref<4x64x64xf32, #tpu.memory_space<vmem>>, vector<1x64x64xf32>
      %98 = vector.shape_cast %97 : vector<1x64x64xf32> to vector<64x64xf32>
      %99 = vector.shape_cast %96 : vector<64x64xf32> to vector<1x64x64xf32>
      tpu.vector_store %arg11[%c3_56, %c0_57, %c0_58], %99 {strides = array<i32>} : memref<4x64x64xf32, #tpu.memory_space<vmem>>, vector<1x64x64xf32>,
    } else {
    }
    %3 = arith.index_cast %arg1 : i32 to index
    %c0 = arith.constant 0 : index
    %c0_1 = arith.constant 0 : index
    %4 = vector.load %arg6[%3, %c0, %c0_1] : memref<2x8x128xbf16, #tpu.memory_space<vmem>>, vector<1x8x128xbf16>
    %5 = vector.shape_cast %4 : vector<1x8x128xbf16> to vector<8x128xbf16>
    %c0_i32_2 = arith.constant 0 : i32
    %c12_i32 = arith.constant 12 : i32
    %6 = arith.addi %c0_i32_2, %c12_i32 : i32
    %c1_i32 = arith.constant 1 : i32
    scf.for %arg14 = %c0_i32_2 to %6 step %c1_i32  : i32 {
      %13 = arith.index_cast %arg14 : i32 to index
      %14 = memref.load %arg2[%13] : memref<12xi32, #tpu.memory_space<smem>>
      %15 = arith.index_cast %14 : i32 to index
      %c0_11 = arith.constant 0 : index
      %c0_12 = arith.constant 0 : index
      %16 = vector.load %arg9[%15, %c0_11, %c0_12] : memref<3x64x64xf32, #tpu.memory_space<vmem>>, vector<1x64x64xf32>
      %17 = vector.shape_cast %16 : vector<1x64x64xf32> to vector<64x64xf32>
      %18 = arith.index_cast %arg14 : i32 to index
      %19 = memref.load %arg3[%18] : memref<12xi32, #tpu.memory_space<smem>>
      %20 = arith.index_cast %arg14 : i32 to index
      %21 = memref.load %arg4[%20] : memref<12xf32, #tpu.memory_space<smem>>
      %22 = arith.index_cast %19 : i32 to index
      %c0_13 = arith.constant 0 : index
      %c0_14 = arith.constant 0 : index
      %23 = vector.load %arg10[%22, %c0_13, %c0_14] : memref<4x64x64xf32, #tpu.memory_space<vmem>>, vector<1x64x64xf32>
      %24 = vector.shape_cast %23 : vector<1x64x64xf32> to vector<64x64xf32>
      %25 = arith.mulf %17, %24 : vector<64x64xf32>
      %26 = arith.truncf %25 : vector<64x64xf32> to vector<64x64xbf16>
      %c0_15 = arith.constant 0 : index
      %c0_16 = arith.constant 0 : index
      %27 = vector.load %arg12[%c0_15, %c0_16] : memref<128x64xbf16, #tpu.memory_space<vmem>>, vector<64x64xbf16>
      tpu.vector_store %arg12[%c0_15, %c0_16], %26 {strides = array<i32>} : memref<128x64xbf16, #tpu.memory_space<vmem>>, vector<64x64xbf16>,
      %28 = arith.index_cast %19 : i32 to index
      %c0_17 = arith.constant 0 : index
      %c0_18 = arith.constant 0 : index
      %29 = vector.load %arg11[%28, %c0_17, %c0_18] : memref<4x64x64xf32, #tpu.memory_space<vmem>>, vector<1x64x64xf32>
      %30 = vector.shape_cast %29 : vector<1x64x64xf32> to vector<64x64xf32>
      %31 = vector.broadcast %21 : f32 to vector<64x64xf32>
      %32 = arith.mulf %31, %30 : vector<64x64xf32>
      %33 = arith.mulf %17, %32 : vector<64x64xf32>
      %34 = arith.truncf %33 : vector<64x64xf32> to vector<64x64xbf16>
      %c64 = arith.constant 64 : index
      %c0_19 = arith.constant 0 : index
      %35 = vector.load %arg12[%c64, %c0_19] : memref<128x64xbf16, #tpu.memory_space<vmem>>, vector<64x64xbf16>
      tpu.vector_store %arg12[%c64, %c0_19], %34 {strides = array<i32>} : memref<128x64xbf16, #tpu.memory_space<vmem>>, vector<64x64xbf16>,
      %c0_20 = arith.constant 0 : index
      %c0_21 = arith.constant 0 : index
      %36 = vector.load %arg12[%c0_20, %c0_21] : memref<128x64xbf16, #tpu.memory_space<vmem>>, vector<128x64xbf16>
      %cst_22 = arith.constant dense<0.000000e+00> : vector<8x64xf32>
      %37 = tpu.matmul %5, %36, %cst_22 {dimension_numbers = #tpu.dot_dimension_numbers<[1], [0], [0], [1], [0, 0, 1, 1], [], []>} : vector<8x128xbf16>, vector<128x64xbf16>, vector<8x64xf32> -> vector<8x64xf32>
      %c8_i32 = arith.constant 8 : i32
      %38 = arith.muli %arg14, %c8_i32 : i32
      %39 = tpu.assume_multiple %38, 8 : i32
      %40 = arith.index_cast %39 : i32 to index
      %c0_23 = arith.constant 0 : index
      %41 = vector.load %arg13[%40, %c0_23] : memref<96x64xf32, #tpu.memory_space<vmem>>, vector<8x64xf32>
      tpu.vector_store %arg13[%40, %c0_23], %37 {strides = array<i32>} : memref<96x64xf32, #tpu.memory_space<vmem>>, vector<8x64xf32>,
    }
    %c12_i32_3 = arith.constant 12 : i32
    %c0_4 = arith.constant 0 : index
    %c0_5 = arith.constant 0 : index
    %7 = vector.load %arg7[%c0_4, %c0_5] : memref<18x96xf32, #tpu.memory_space<vmem>>, vector<18x96xf32>
    %c0_6 = arith.constant 0 : index
    %c0_7 = arith.constant 0 : index
    %8 = vector.load %arg13[%c0_6, %c0_7] : memref<96x64xf32, #tpu.memory_space<vmem>>, vector<96x64xf32>
    %cst = arith.constant dense<0.000000e+00> : vector<18x64xf32>
    %9 = tpu.matmul %7, %8, %cst {dimension_numbers = #tpu.dot_dimension_numbers<[1], [0], [0], [1], [0, 0, 1, 1], [], []>} : vector<18x96xf32>, vector<96x64xf32>, vector<18x64xf32> -> vector<18x64xf32>
    %c0_8 = arith.constant 0 : index
    %c0_9 = arith.constant 0 : index
    %c0_10 = arith.constant 0 : index
    %10 = vector.load %arg8[%c0_8, %c0_9, %c0_10] : memref<1x18x64xf32, #tpu.memory_space<vmem>>, vector<1x18x64xf32>
    %11 = vector.shape_cast %10 : vector<1x18x64xf32> to vector<18x64xf32>
    %12 = vector.shape_cast %9 : vector<18x64xf32> to vector<1x18x64xf32>
    tpu.vector_store %arg8[%c0_8, %c0_9, %c0_10], %12 {strides = array<i32>} : memref<1x18x64xf32, #tpu.memory_space<vmem>>, vector<1x18x64xf32>,
    return
  }
  func.func @transform_0(%arg0: i32, %arg1: i32) -> i32 {
    %c0_i32 = arith.constant 0 : i32
    %c0_i32_0 = arith.constant 0 : i32
    return %c0_i32 : i32
  }
  func.func @transform_1(%arg0: i32, %arg1: i32) -> i32 {
    %c0_i32 = arith.constant 0 : i32
    %c0_i32_0 = arith.constant 0 : i32
    return %c0_i32 : i32
  }
  func.func @transform_2(%arg0: i32, %arg1: i32) -> i32 {
    %c0_i32 = arith.constant 0 : i32
    %c0_i32_0 = arith.constant 0 : i32
    return %c0_i32 : i32
  }
  func.func @transform_3(%arg0: i32, %arg1: i32) -> (i32, i32, i32) {
    %c0_i32 = arith.constant 0 : i32
    %c0_i32_0 = arith.constant 0 : i32
    %c0_i32_1 = arith.constant 0 : i32
    return %c0_i32, %c0_i32_0, %arg0 : i32, i32, i32
  }
  func.func @transform_4(%arg0: i32, %arg1: i32) -> (i32, i32, i32) {
    %c0_i32 = arith.constant 0 : i32
    %c0_i32_0 = arith.constant 0 : i32
    %c0_i32_1 = arith.constant 0 : i32
    %c0_i32_2 = arith.constant 0 : i32
    return %c0_i32, %c0_i32_0, %c0_i32_1 : i32, i32, i32
  }
  func.func @transform_5(%arg0: i32, %arg1: i32) -> (i32, i32) {
    %c0_i32 = arith.constant 0 : i32
    %c0_i32_0 = arith.constant 0 : i32
    %c0_i32_1 = arith.constant 0 : i32
    return %c0_i32, %c0_i32_0 : i32, i32
  }
  func.func @transform_6(%arg0: i32, %arg1: i32) -> (i32, i32, i32) {
    %c0_i32 = arith.constant 0 : i32
    %c0_i32_0 = arith.constant 0 : i32
    return %arg1, %c0_i32, %arg0 : i32, i32, i32
  }
}

</mosaic_0001>

<bundles_post_ra>
// kernel: tpu_custom_call.1
= control target key start
LH: loop header
LB: loop body
LE: loop exit
PB: predicated region body
PF: predicated region fallthrough
CT: control target
= control target key end

     0   :  { %11 = vsyncpa [#allocation9], 0  ;;  %s4909_s0 = inlined_call_operand.hbm [shape: s32[12], index: 0, kind: input, shape index: {}]   ;;  %s4910_s1 = inlined_call_operand.vmem [shape: s32[12], index: 1, kind: input, shape index: {}]   ;;  %s4911_s2 = inlined_call_operand.vmem [shape: f32[12], index: 2, kind: input, shape index: {}]   ;;  %s4912_s3 = inlined_call_operand.hbm [shape: f32[2,64,64], index: 3, kind: input, shape index: {}]   ;;  %s4913_s4 = inlined_call_operand.vmem [shape: bf16[2,8,128], index: 4, kind: input, shape index: {}]   ;;  %s4914_s5 = inlined_call_operand.hbm [shape: f32[18,96], index: 5, kind: input, shape index: {}]   ;;  %s4915_s6 = inlined_call_operand.vmem [shape: f32[2,18,64], index: 6, kind: output, shape index: {}]  }
   0x1   :  { %12 = vsyncpa [#allocation10], 0 }
   0x2   :  { %13 = vsyncpa [#allocation13], 0 }
   0x3   :  { %14 = vsyncpa [#allocation8], 0 }
   0x4   :  { %15 = vsyncpa [#allocation16], 0  ;;  %s3424_s21 = smov 0   ;;  %s3426_s22 = smov 0  }
   0x5   :  { %s3428_s23 = smov 0  }
   0x6 LB: > { %s2781_s24 = sadd.s32 4294967295, %s3363_s23   ;;  %s30_s25 = sadd.s32 1, %s3359_s22  ;;  %s3363_s23 = sphi %s3428_s23, %s21_s23   ;;  %s3359_s22 = sphi %s3426_s22, %s5018_s22   ;;  %s3355_s21 = sphi %s3424_s21, %s5017_s21  }
   0x7   : > { %p31_p0 = scmp.ge.s32.totalorder %s30_s25, 2  ;;  %p2783_p1 = scmp.ge.s32.totalorder %s3363_s23, 1 }
   0x8   : > { %p197_p2 = scmp.lt.s32.totalorder %s3363_s23, 3  ;;  %p3449_p4 = scmp.eq.s32.totalorder %s2781_s24, 0 }
   0x9   : > { %s5020_s25 = smov (%p31_p0, %s30_s25), 0  ;;  %s219_s30 = sshll.u32 %s4910_s1, 4  ;;  %s220_s30 = int_to_ptr.vmem [resolvable:$true] %s219_s30 }
   0xa   : > { %p3445_p3 = pnand %p2783_p1, %p197_p2  ;;  %s230_s9 = sshll.u32 %s4911_s2, 4  ;;  %s3467_s9 = int_to_ptr.vmem [resolvable:$true] %s230_s9 }
   0xb   : > { %s4960_s27 = scalar_select %p3449_p4, 1, 0 }
   0xc   : > { %s4959_s26 = scalar_select %p3445_p3, 1, 0 }
   0xd   : > { %p3054_p5 = pneg %p3445_p3  ;;  %s3369_s11 = smov [#allocation14]  }
   0xe   : > { %s3469_s12 = sshll.u32 %s3369_s11, 4  ;;  %s3218_s15 = scalar_lea.hbm %s4909_s0, 16  ;;  %s243_s12 = int_to_ptr.vmem [resolvable:$true] %s3469_s12 }
   0xf   : > { %p3463_p6 = pnand %p3449_p4, %p3054_p5  ;;  %p3219_p7 = scmp.ne.s32.totalorder %s4909_s0, %s3218_s15 }
  0x10   : > { %p3225_p11 = scmp.lt.u32.totalorder %s3218_s15, %s4909_s0 }
  0x11   : > { %p3479_p8 = pneg %p3463_p6 }
  0x13   : > { %p3221_p9 = pnand %p3479_p8, %p3219_p7 }
  0x15   : > { %p3222_p10 = pneg %p3221_p9 }
  0x17   : > { %p3227_p12 = pnand %p3225_p11, %p3222_p10 }
  0x19   : > { %3230 = shalt.err (!%p3227_p12)
}
  0x1a   : > { %s3370_s24 = smov [#allocation7]   ;;  %s3231_s7 = scalar_lea.vmem %s220_s30, 16 }
  0x1b   : > { %3057 = dma.hbm_to_smem (!%p3463_p6), %s4909_s0, 16, %s3370_s24, [#allocation9]  }
  0x1c   : > { %p3232_p13 = scmp.ne.s32.totalorder %s220_s30, %s3231_s7  ;;  %p3239_p2 = scmp.lt.s32.totalorder %s220_s30, %s220_s30 }
  0x1d   : > { %p3240_p5 = scmp.lt.s32.totalorder %s3231_s7, %s3231_s7 }
  0x1e   : > { %p3234_p0 = pnand %p3232_p13, %p3479_p8 }
  0x1f   : > { %p3241_p7 = por %p3240_p5, %p3239_p2 }
  0x20   : > { %p3235_p1 = pneg %p3234_p0 }
  0x22   : > { %p3242_p9 = pnand %p3241_p7, %p3235_p1 }
  0x24   : > { %3245 = shalt.err (!%p3242_p9)
}
  0x25   : > { %s3371_s8 = smov [#allocation11]   ;;  %s3246_s11 = scalar_lea.vmem %s3467_s9, 16 }
  0x26   : > { %3060 = dma.vmem_to_smem (!%p3463_p6), %s220_s30, 16, %s3371_s8, [#allocation10]  }
  0x27   : > { %p3247_p10 = scmp.ne.s32.totalorder %s3467_s9, %s3246_s11  ;;  %p3254_p13 = scmp.lt.s32.totalorder %s3467_s9, %s3467_s9 }
  0x28   : > { %p3255_p0 = scmp.lt.s32.totalorder %s3246_s11, %s3246_s11 }
  0x29   : > { %p3249_p11 = pnand %p3247_p10, %p3479_p8 }
  0x2a   : > { %p3256_p4 = por %p3255_p0, %p3254_p13 }
  0x2b   : > { %p3250_p12 = pneg %p3249_p11 }
  0x2d   : > { %p3257_p2 = pnand %p3256_p4, %p3250_p12 }
  0x2f   : > { %3260 = shalt.err (!%p3257_p2)
}
  0x30   : > { %s3372_s13 = smov [#allocation12]   ;;  %s3261_s15 = scalar_lea.hbm %s4912_s3, 2048 }
  0x31   : > { %3063 = dma.vmem_to_smem (!%p3463_p6), %s3467_s9, 16, %s3372_s13, [#allocation13]  }
  0x32   : > { %p3262_p1 = scmp.ne.s32.totalorder %s4912_s3, %s3261_s15  ;;  %p3268_p7 = scmp.lt.u32.totalorder %s3261_s15, %s4912_s3 }
  0x34   : > { %p3264_p5 = pnand %p3262_p1, %p3479_p8 }
  0x36   : > { %p3265_p4 = pneg %p3264_p5 }
  0x38   : > { %p3270_p9 = pnand %p3268_p7, %p3265_p4 }
  0x3a   : > { %3273 = shalt.err (!%p3270_p9)
}
  0x3b   : > { %s3274_s24 = scalar_lea.vmem %s243_s12, 2048  ;;  %p3282_p13 = scmp.lt.s32.totalorder %s243_s12, %s243_s12 }
  0x3c   : > { %p3275_p10 = scmp.ne.s32.totalorder %s243_s12, %s3274_s24  ;;  %p3283_p0 = scmp.lt.s32.totalorder %s3274_s24, %s3274_s24 }
  0x3e   : > { %p3277_p11 = pnand %p3275_p10, %p3479_p8  ;;  %p3284_p2 = por %p3283_p0, %p3282_p13 }
  0x40   : > { %p3278_p12 = pneg %p3277_p11 }
  0x42   : > { %p3285_p3 = pnand %p3284_p2, %p3278_p12 }
  0x44   : > { %3288 = shalt.err (!%p3285_p3)
}
  0x45   : > { %s3373_s9 = smov 128   ;;  %s3374_s28 = smov 8  }
  0x46   : > { %3066 = dma.hbm_to_vmem [thread:$0]  (!%p3463_p6), %s4912_s3, 2048, %s243_s12, [#allocation8], %s3373_s9, %s3373_s9, %s3374_s28  }
  0x47   : > { %s3375_s8 = smov [#allocation15]   ;;  %s3289_s14 = scalar_lea.hbm %s4914_s5, 384 }
  0x48   : > { %s258_s11 = sshll.u32 %s3375_s8, 4  ;;  %p3290_p3 = scmp.ne.s32.totalorder %s4914_s5, %s3289_s14  ;;  %s259_s11 = int_to_ptr.vmem [resolvable:$true] %s258_s11 }
  0x49   : > { %p3296_p4 = scmp.lt.u32.totalorder %s3289_s14, %s4914_s5 }
  0x4a   : > { %p3292_p1 = pnand %p3290_p3, %p3479_p8 }
  0x4c   : > { %p3293_p5 = pneg %p3292_p1 }
  0x4e   : > { %p3298_p7 = pnand %p3296_p4, %p3293_p5 }
  0x50   : > { %3301 = shalt.err (!%p3298_p7)
}
  0x51   : > { %s3302_s12 = scalar_lea.vmem %s259_s11, 384  ;;  %p3310_p12 = scmp.lt.s32.totalorder %s259_s11, %s259_s11 }
  0x52   : > { %p3303_p9 = scmp.ne.s32.totalorder %s259_s11, %s3302_s12  ;;  %p3311_p13 = scmp.lt.s32.totalorder %s3302_s12, %s3302_s12 }
  0x54   : > { %p3305_p10 = pnand %p3303_p9, %p3479_p8  ;;  %p3312_p0 = por %p3311_p13, %p3310_p12 }
  0x56   : > { %p3306_p11 = pneg %p3305_p10 }
  0x58   : > { %p3313_p2 = pnand %p3312_p0, %p3306_p11 }
  0x5a   : > { %3316 = shalt.err (!%p3313_p2)
}
  0x5b   : > { %3069 = dma.hbm_to_vmem [thread:$0]  (!%p3463_p6), %s4914_s5, 384, %s259_s11, [#allocation16], %s3373_s9, %s3373_s9, %s3374_s28  }
  0x5c   : > { %p4963_p3 = scmp.ne.s32.totalorder %s4959_s26, 0 }
  0x5d   : > { %p4964_p1 = scmp.ne.s32.totalorder (!%p4963_p3), %s4960_s27, 0 }
  0x5e   : > { %274 = sbr.rel (%p4963_p3) target bundleno = 940 (0x3ac), region = 44 }
  0x65   : > { %3334 = dma.done.wait (%p4964_p1), [#allocation9], 16  }
  0x66   : > { %3336 = vsyncadd (%p4964_p1), [#allocation9], 4294967280 }
  0x67   : > { %3338 = dma.done.wait (%p4964_p1), [#allocation10], 16  }
  0x68   : > { %3340 = vsyncadd (%p4964_p1), [#allocation10], 4294967280 }
  0x69   : > { %3342 = dma.done.wait (%p4964_p1), [#allocation13], 16  }
  0x6a   : > { %3344 = vsyncadd (%p4964_p1), [#allocation13], 4294967280 }
  0x6b   : > { %3346 = dma.done.wait (%p4964_p1), [#allocation8], 2048  }
  0x6c   : > { %3348 = vsyncadd (%p4964_p1), [#allocation8], 4294965248 }
  0x6d   : > { %3350 = dma.done.wait (%p4964_p1), [#allocation16], 384  }
  0x6e   : > { %3352 = vsyncadd (%p4964_p1), [#allocation16], 4294966912 }
  0x6f   : > { %296 = sfence }
  0x70   : > { %p319_p6 = scmp.lt.s32.totalorder %s3355_s21, 1  ;;  %p2796_p8 = scmp.ne.s32.totalorder %s3355_s21, 0 }
  0x72   : > { %s320_s26 = scalar_select %p319_p6, %s3355_s21, 1 }
  0x73   : > { %331 = sbr.rel (%p2796_p8) target bundleno = 422 (0x1a6), region = 68 }
  0x74   : > { %s3001_s10 = smul.u32 24, %s320_s26 }
  0x76   : > { %s3570_s28 = scalar_lea.vmem %s4915_s6, %s3001_s10 }
  0x7a   : > { %v3573_v0 = vld [vmem:[#allocation14] sm:$0xff]  ;;  %vm413_vm0 = vcmask 523264   ;;  %v3575_v1 = vld [vmem:[#allocation14 + $0x8] sm:$0xff]  ;;  %v3577_v2 = vld [vmem:[#allocation14 + $0x10] sm:$0xff]  ;;  %v3376_v6 = vmov 1.0   ;;  %v4934_v7 = vmov 0.0  }
  0x7b   : > { %v373_v3 = vmul.f32 141.42136, %v3573_v0  ;;  %v374_v4 = vmul.f32 141.42136, %v3575_v1  ;;  %v375_v5 = vmul.f32 141.42136, %v3577_v2 }
  0x7c   : > { %536 = vst.msk [vmem:[#allocation3] sm:$0xff] %vm413_vm0, %v3376_v6  ;;  %537 = vst.msk [vmem:[#allocation3 + $0x8] sm:$0xff] %vm413_vm0, %v3376_v6  ;;  %v3606_v8 = vld [vmem:[#allocation14 + $0x18] sm:$0xff]  ;;  %v2805_v9 = vadd.f32 -1.0, %v3573_v0  ;;  %v2806_v10 = vadd.f32 -1.0, %v3575_v1  ;;  %v2807_v11 = vadd.f32 -1.0, %v3577_v2 }
  0x7d   : > { %538 = vst.msk [vmem:[#allocation3 + $0x10] sm:$0xff] %vm413_vm0, %v3376_v6  ;;  %539 = vst.msk [vmem:[#allocation3 + $0x18] sm:$0xff] %vm413_vm0, %v3376_v6  ;;  %v381_v12 = vmul.f32 %v373_v3, %v373_v3  ;;  %v382_v13 = vmul.f32 %v374_v4, %v374_v4  ;;  %v383_v14 = vmul.f32 %v375_v5, %v375_v5  ;;  %v376_v15 = vmul.f32 141.42136, %v3606_v8  ;;  %v3612_v16 = vld [vmem:[#allocation14 + $0x20] sm:$0xff]  ;;  %v3614_v17 = vld [vmem:[#allocation14 + $0x28] sm:$0xff] }
  0x7e   : > { %540 = vst.msk [vmem:[#allocation3 + $0x20] sm:$0xff] %vm413_vm0, %v3376_v6  ;;  %541 = vst.msk [vmem:[#allocation3 + $0x28] sm:$0xff] %vm413_vm0, %v3376_v6  ;;  %v3616_v18 = vld [vmem:[#allocation14 + $0x30] sm:$0xff]  ;;  %v377_v19 = vmul.f32 141.42136, %v3612_v16  ;;  %v3621_v26 = vld [vmem:[#allocation14 + $0x38] sm:$0xff] }
  0x7f   : > { %542 = vst.msk [vmem:[#allocation3 + $0x30] sm:$0xff] %vm413_vm0, %v3376_v6  ;;  %543 = vst.msk [vmem:[#allocation3 + $0x38] sm:$0xff] %vm413_vm0, %v3376_v6  ;;  %v378_v20 = vmul.f32 141.42136, %v3614_v17  ;;  %v379_v21 = vmul.f32 141.42136, %v3616_v18  ;;  %v384_v25 = vmul.f32 %v376_v15, %v376_v15 }
  0x80   : > { %544 = vst.msk [vmem:[#allocation4] sm:$0xff] %vm413_vm0, %v4934_v7  ;;  %545 = vst.msk [vmem:[#allocation4 + $0x8] sm:$0xff] %vm413_vm0, %v4934_v7  ;;  %v389_v22 = vsub.f32 0.0, %v381_v12  ;;  %v390_v23 = vsub.f32 0.0, %v382_v13  ;;  %v391_v24 = vsub.f32 0.0, %v383_v14  ;;  %v385_v27 = vmul.f32 %v377_v19, %v377_v19 }
  0x81   : > { %546 = vst.msk [vmem:[#allocation4 + $0x10] sm:$0xff] %vm413_vm0, %v4934_v7  ;;  %547 = vst.msk [vmem:[#allocation4 + $0x18] sm:$0xff] %vm413_vm0, %v4934_v7  ;;  %v386_v28 = vmul.f32 %v378_v20, %v378_v20  ;;  %v387_v29 = vmul.f32 %v379_v21, %v379_v21  ;;  %v380_v30 = vmul.f32 141.42136, %v3621_v26  ;;  %v392_v34 = vsub.f32 0.0, %v384_v25 }
  0x82   : > { %548 = vst.msk [vmem:[#allocation4 + $0x20] sm:$0xff] %vm413_vm0, %v4934_v7  ;;  %549 = vst.msk [vmem:[#allocation4 + $0x28] sm:$0xff] %vm413_vm0, %v4934_v7  ;;  %v397_v31 = vmul.f32 1.442695, %v389_v22  ;;  %v399_v32 = vmul.f32 1.442695, %v390_v23 }
  0x83   : > { %550 = vst.msk [vmem:[#allocation4 + $0x30] sm:$0xff] %vm413_vm0, %v4934_v7  ;;  %551 = vst.msk [vmem:[#allocation4 + $0x38] sm:$0xff] %vm413_vm0, %v4934_v7  ;;  %v401_v33 = vmul.f32 1.442695, %v391_v24  ;;  %v393_v35 = vsub.f32 0.0, %v385_v27  ;;  %v394_v36 = vsub.f32 0.0, %v386_v28  ;;  %v388_v38 = vmul.f32 %v380_v30, %v380_v30 }
  0x84   : > { %v395_v37 = vsub.f32 0.0, %v387_v29  ;;  %3132 = vpow2.f32 %v397_v31  ;;  %v430_v39 = vmul.f32 1.1785113, %v2805_v9  ;;  %v431_v40 = vmul.f32 1.1785113, %v2806_v10 }
  0x85   : > { %3134 = vpow2.f32 %v399_v32  ;;  %v403_v41 = vmul.f32 1.442695, %v392_v34  ;;  %v405_v42 = vmul.f32 1.442695, %v393_v35  ;;  %v407_v43 = vmul.f32 1.442695, %v394_v36 }
  0x86   : > { %3136 = vpow2.f32 %v401_v33  ;;  %v409_v44 = vmul.f32 1.442695, %v395_v37  ;;  %v396_v45 = vsub.f32 0.0, %v388_v38  ;;  %v438_v46 = vmul.f32 %v430_v39, %v430_v39 }
  0x87   : > { %3138 = vpow2.f32 %v403_v41  ;;  %v439_v47 = vmul.f32 %v431_v40, %v431_v40  ;;  %v432_v48 = vmul.f32 1.1785113, %v2807_v11  ;;  %v2808_v49 = vadd.f32 -1.0, %v3606_v8 }
  0x88   : > { %3140 = vpow2.f32 %v405_v42  ;;  %v411_v50 = vmul.f32 1.442695, %v396_v45  ;;  %v446_v51 = vsub.f32 0.0, %v438_v46  ;;  %v2809_v52 = vadd.f32 -1.0, %v3612_v16 }
  0x89   : > { %3142 = vpow2.f32 %v407_v43  ;;  %v447_v53 = vsub.f32 0.0, %v439_v47  ;;  %v440_v54 = vmul.f32 %v432_v48, %v432_v48  ;;  %v433_v55 = vmul.f32 1.1785113, %v2808_v49 }
  0x8a   : > { %3144 = vpow2.f32 %v409_v44  ;;  %v454_v56 = vmul.f32 1.442695, %v446_v51  ;;  %v434_v57 = vmul.f32 1.1785113, %v2809_v52  ;;  %v2810_v58 = vadd.f32 -1.0, %v3614_v17 }
  0x8b   : > { %3146 = vpow2.f32 %v411_v50  ;;  %v456_v59 = vmul.f32 1.442695, %v447_v53  ;;  %v448_v60 = vsub.f32 0.0, %v440_v54  ;;  %v441_v61 = vmul.f32 %v433_v55, %v433_v55 }
  0x8c   : > { %3148 = vpow2.f32 %v454_v56  ;;  %v442_v62 = vmul.f32 %v434_v57, %v434_v57  ;;  %v435_v63 = vmul.f32 1.1785113, %v2810_v58  ;;  %v2811_v3 = vadd.f32 -1.0, %v3616_v18 }
  0x8d   : > { %3150 = vpow2.f32 %v456_v59  ;;  %v458_v4 = vmul.f32 1.442695, %v448_v60  ;;  %v449_v5 = vsub.f32 0.0, %v441_v61  ;;  %v2812_v6 = vadd.f32 -1.0, %v3621_v26 }
  0x8e   : > { %v3133_v9 = vpop.eup %3132  ;;  %v450_v10 = vsub.f32 0.0, %v442_v62  ;;  %v443_v11 = vmul.f32 %v435_v63, %v435_v63  ;;  %v436_v12 = vmul.f32 1.1785113, %v2811_v3  ;;  %v2813_v13 = vadd.f32 -2.0, %v3573_v0  ;;  %v3648_v63 = vld [vmem:[#allocation14 + $0x40] sm:$0xff] }
  0x8f   : > { %v3135_v14 = vpop.eup %3134  ;;  %414 = vst.msk [vmem:[#allocation2] sm:$0xff] %vm413_vm0, %v3133_v9  ;;  %3152 = vpow2.f32 %v458_v4  ;;  %v460_v15 = vmul.f32 1.442695, %v449_v5  ;;  %v437_v19 = vmul.f32 1.1785113, %v2812_v6  ;;  %v2814_v20 = vadd.f32 -2.0, %v3575_v1 }
  0x90   : > { %v3137_v21 = vpop.eup %3136  ;;  %415 = vst.msk [vmem:[#allocation2 + $0x8] sm:$0xff] %vm413_vm0, %v3135_v14  ;;  %v462_v22 = vmul.f32 1.442695, %v450_v10  ;;  %v451_v23 = vsub.f32 0.0, %v443_v11  ;;  %v444_v24 = vmul.f32 %v436_v12, %v436_v12  ;;  %v487_v25 = vmul.f32 1.767767, %v2813_v13 }
  0x91   : > { %v3139_v27 = vpop.eup %3138  ;;  %416 = vst.msk [vmem:[#allocation2 + $0x10] sm:$0xff] %vm413_vm0, %v3137_v21  ;;  %3154 = vpow2.f32 %v460_v15  ;;  %v445_v28 = vmul.f32 %v437_v19, %v437_v19  ;;  %v488_v29 = vmul.f32 1.767767, %v2814_v20  ;;  %v2815_v30 = vadd.f32 -2.0, %v3577_v2 }
  0x92   : > { %v3141_v31 = vpop.eup %3140  ;;  %417 = vst.msk [vmem:[#allocation2 + $0x18] sm:$0xff] %vm413_vm0, %v3139_v27  ;;  %3156 = vpow2.f32 %v462_v22  ;;  %v464_v32 = vmul.f32 1.442695, %v451_v23  ;;  %v452_v33 = vsub.f32 0.0, %v444_v24  ;;  %v495_v34 = vmul.f32 %v487_v25, %v487_v25 }
  0x93   : > { %v3143_v35 = vpop.eup %3142  ;;  %418 = vst.msk [vmem:[#allocation2 + $0x20] sm:$0xff] %vm413_vm0, %v3141_v31  ;;  %v453_v36 = vsub.f32 0.0, %v445_v28  ;;  %v496_v37 = vmul.f32 %v488_v29, %v488_v29  ;;  %v489_v38 = vmul.f32 1.767767, %v2815_v30  ;;  %v2816_v39 = vadd.f32 -2.0, %v3606_v8  ;;  %v3658_v28 = vld [vmem:[#allocation14 + $0x48] sm:$0xff] }
  0x94   : > { %v3145_v40 = vpop.eup %3144  ;;  %419 = vst.msk [vmem:[#allocation2 + $0x28] sm:$0xff] %vm413_vm0, %v3143_v35  ;;  %3158 = vpow2.f32 %v464_v32  ;;  %v466_v2 = vmul.f32 1.442695, %v452_v33  ;;  %v503_v41 = vsub.f32 0.0, %v495_v34  ;;  %v2817_v42 = vadd.f32 -2.0, %v3612_v16 }
  0x95   : > { %v3147_v43 = vpop.eup %3146  ;;  %420 = vst.msk [vmem:[#allocation2 + $0x30] sm:$0xff] %vm413_vm0, %v3145_v40  ;;  %v468_v44 = vmul.f32 1.442695, %v453_v36  ;;  %v504_v45 = vsub.f32 0.0, %v496_v37  ;;  %v497_v46 = vmul.f32 %v489_v38, %v489_v38  ;;  %v490_v47 = vmul.f32 1.767767, %v2816_v39 }
  0x96   : > { %v3149_v48 = vpop.eup %3148  ;;  %421 = vst.msk [vmem:[#allocation2 + $0x38] sm:$0xff] %vm413_vm0, %v3147_v43  ;;  %3160 = vpow2.f32 %v466_v2  ;;  %v511_v8 = vmul.f32 1.442695, %v503_v41  ;;  %v491_v49 = vmul.f32 1.767767, %v2817_v42  ;;  %v2818_v50 = vadd.f32 -2.0, %v3614_v17 }
  0x97   : > { %v3151_v51 = vpop.eup %3150  ;;  %471 = vst.msk [vmem:[#allocation2 + $0x40] sm:$0xff] %vm413_vm0, %v3149_v48  ;;  %3162 = vpow2.f32 %v468_v44  ;;  %v513_v16 = vmul.f32 1.442695, %v504_v45  ;;  %v505_v52 = vsub.f32 0.0, %v497_v46  ;;  %v498_v53 = vmul.f32 %v490_v47, %v490_v47  ;;  %v3670_v2 = vld [vmem:[#allocation14 + $0x50] sm:$0xff] }
  0x98   : > { %472 = vst.msk [vmem:[#allocation2 + $0x48] sm:$0xff] %vm413_vm0, %v3151_v51  ;;  %3164 = vpow2.f32 %v511_v8  ;;  %v499_v54 = vmul.f32 %v491_v49, %v491_v49  ;;  %v492_v55 = vmul.f32 1.767767, %v2818_v50  ;;  %v2819_v56 = vadd.f32 -2.0, %v3616_v18 }
  0x99   : > { %v3153_v57 = vpop.eup %3152  ;;  %3166 = vpow2.f32 %v513_v16  ;;  %v515_v58 = vmul.f32 1.442695, %v505_v52  ;;  %v506_v59 = vsub.f32 0.0, %v498_v53  ;;  %v2820_v17 = vadd.f32 -2.0, %v3621_v26 }
  0x9a   : > { %473 = vst.msk [vmem:[#allocation2 + $0x50] sm:$0xff] %vm413_vm0, %v3153_v57  ;;  %v507_v60 = vsub.f32 0.0, %v499_v54  ;;  %v500_v61 = vmul.f32 %v492_v55, %v492_v55  ;;  %v493_v62 = vmul.f32 1.767767, %v2819_v56  ;;  %v552_v11 = vand.u32 2147483647, %v3648_v63 }
  0x9b   : > { %v3155_v3 = vpop.eup %3154  ;;  %3168 = vpow2.f32 %v515_v58  ;;  %v517_v4 = vmul.f32 1.442695, %v506_v59  ;;  %v494_v5 = vmul.f32 1.767767, %v2820_v17  ;;  %v555_v12 = vand.u32 2139095040, %v3648_v63 }
  0x9c   : > { %v3157_v6 = vpop.eup %3156  ;;  %474 = vst.msk [vmem:[#allocation2 + $0x58] sm:$0xff] %vm413_vm0, %v3155_v3  ;;  %v519_v18 = vmul.f32 1.442695, %v507_v60  ;;  %v508_v9 = vsub.f32 0.0, %v500_v61  ;;  %v501_v10 = vmul.f32 %v493_v62, %v493_v62  ;;  %v559_v23 = vand.u32 8388607, %v552_v11 }
  0x9d   : > { %475 = vst.msk [vmem:[#allocation2 + $0x60] sm:$0xff] %vm413_vm0, %v3157_v6  ;;  %3170 = vpow2.f32 %v517_v4  ;;  %v502_v26 = vmul.f32 %v494_v5, %v494_v5  ;;  %v556_v20 = vshrl.u32 %v555_v12, 23  ;;  %v655_v33 = vand.u32 2147483647, %v3658_v28 }
  0x9e   : > { %v3159_v13 = vpop.eup %3158  ;;  %3172 = vpow2.f32 %v519_v18  ;;  %v521_v14 = vmul.f32 1.442695, %v508_v9  ;;  %v509_v15 = vsub.f32 0.0, %v501_v10  ;;  %v560_v32 = vor.u32 8388608, %v559_v23 }
  0x9f   : > { %476 = vst.msk [vmem:[#allocation2 + $0x68] sm:$0xff] %vm413_vm0, %v3159_v13  ;;  %v510_v19 = vsub.f32 0.0, %v502_v26  ;;  %v2821_v27 = vadd.s32 4294967169, %v556_v20  ;;  %v658_v34 = vand.u32 2139095040, %v3658_v28  ;;  %v3668_v38 = vand.u32 8388607, %v655_v33 }
  0xa0   : > { %v3161_v21 = vpop.eup %3160  ;;  %3174 = vpow2.f32 %v521_v14  ;;  %v523_v22 = vmul.f32 1.442695, %v509_v15  ;;  %v3673_v43 = vshll.u32 %v560_v32, 8  ;;  %v4939_v46 = vmov 683565275  }
  0xa1   : > { %v3163_v24 = vpop.eup %3162  ;;  %477 = vst.msk [vmem:[#allocation2 + $0x70] sm:$0xff] %vm413_vm0, %v3161_v21  ;;  %v525_v25 = vmul.f32 1.442695, %v510_v19  ;;  %v562_v31 = vadd.s32 1, %v2821_v27  ;;  %v659_v37 = vshrl.u32 %v658_v34, 23  ;;  %v663_v55 = vor.u32 8388608, %v3668_v38 }
  0xa2   : > { %v3165_v29 = vpop.eup %3164  ;;  %478 = vst.msk [vmem:[#allocation2 + $0x78] sm:$0xff] %vm413_vm0, %v3163_v24  ;;  %3176 = vpow2.f32 %v523_v22  ;;  %v4930_v48 = vmov 2475754826   ;;  %v4932_v49 = vmov 2131351028   ;;  %v761_v56 = vand.u32 2139095040, %v3670_v2 }
  0xa3   : > { %v3167_v30 = vpop.eup %3166  ;;  %528 = vst.msk [vmem:[#allocation2 + $0x80] sm:$0xff] %vm413_vm0, %v3165_v29  ;;  %3178 = vpow2.f32 %v525_v25  ;;  %vm563_vm1 = vcmp.gt.s32.totalorder %v562_v31, 0  ;;  %v2825_v44 = vadd.s32 4294967169, %v659_v37  ;;  %v4937_v16 = vmov 2102212464  }
  0xa4   : > { %529 = vst.msk [vmem:[#allocation2 + $0x88] sm:$0xff] %vm413_vm0, %v3167_v30  ;;  %v564_v36 = vsel %vm563_vm1, %v562_v31, 0  ;;  %v4943_v53 = vmov 920167782   ;;  %v4935_v62 = vmov 1326507024  }
  0xa5   : > { %v3169_v35 = vpop.eup %3168  ;;  %v566_v40 = vand.u32 31, %v564_v36  ;;  %v565_v42 = vshrl.u32 %v564_v36, 5  ;;  %v665_v9 = vadd.s32 1, %v2825_v44  ;;  %v762_v25 = vshrl.u32 %v761_v56, 23 }
  0xa6   : > { %530 = vst.msk [vmem:[#allocation2 + $0x90] sm:$0xff] %vm413_vm0, %v3169_v35  ;;  %v758_v38 = vand.u32 2147483647, %v3670_v2  ;;  %vm554_vm14 = vcmp.lt.s32.totalorder %v3648_v63, 0 }
  0xa7   : > { %v3171_v39 = vpop.eup %3170  ;;  %v567_v45 = vsub.s32 32, %v566_v40  ;;  %v569_v47 = vshll.u32 %v4939_v46, %v566_v40  ;;  %v572_v8 = vshll.u32 %v4930_v48, %v566_v40  ;;  %v575_v50 = vshll.u32 %v4932_v49, %v566_v40 }
  0xa8   : > { %v3173_v41 = vpop.eup %3172  ;;  %531 = vst.msk [vmem:[#allocation2 + $0x98] sm:$0xff] %vm413_vm0, %v3171_v39  ;;  %v578_v52 = vshll.u32 %v4937_v16, %v566_v40  ;;  %v581_v54 = vshll.u32 %v4943_v53, %v566_v40  ;;  %vm584_vm2 = vcmp.lt.s32.totalorder %v565_v42, 1  ;;  %vm587_vm3 = vcmp.lt.s32.totalorder %v565_v42, 4 }
  0xa9   : > { %532 = vst.msk [vmem:[#allocation2 + $0xa0] sm:$0xff] %vm413_vm0, %v3173_v41  ;;  %v568_v57 = vshrl.u32 %v4939_v46, %v567_v45  ;;  %v570_v58 = vshrl.u32 %v4930_v48, %v567_v45  ;;  %v573_v59 = vshrl.u32 %v4932_v49, %v567_v45  ;;  %v576_v17 = vshrl.u32 %v4937_v16, %v567_v45 }
  0xaa   : > { %v3175_v51 = vpop.eup %3174  ;;  %v579_v61 = vshrl.u32 %v4943_v53, %v567_v45  ;;  %v582_v3 = vshrl.u32 %v4935_v62, %v567_v45  ;;  %vm585_vm4 = vcmp.lt.s32.totalorder %v565_v42, 2  ;;  %vm586_vm5 = vcmp.lt.s32.totalorder %v565_v42, 3 }
  0xab   : > { %533 = vst.msk [vmem:[#allocation2 + $0xa8] sm:$0xff] %vm413_vm0, %v3175_v51  ;;  %v571_v5 = vor.u32 %v570_v58, %v569_v47  ;;  %v574_v6 = vor.u32 %v573_v59, %v572_v8  ;;  %v577_v18 = vor.u32 %v576_v17, %v575_v50  ;;  %vm666_vm6 = vcmp.gt.s32.totalorder %v665_v9, 0 }
  0xac   : > { %v3177_v60 = vpop.eup %3176  ;;  %v580_v10 = vor.u32 %v579_v61, %v578_v52  ;;  %v583_v26 = vor.u32 %v582_v3, %v581_v54  ;;  %v667_v24 = vsel %vm666_vm6, %v665_v9, 0  ;;  %v3712_v40 = vshll.u32 %v663_v55, 8 }
  0xad   : > { %v3179_v4 = vpop.eup %3178  ;;  %534 = vst.msk [vmem:[#allocation2 + $0xb0] sm:$0xff] %vm413_vm0, %v3177_v60  ;;  %v588_v12 = vsel %vm584_vm2, %v568_v57, %v571_v5  ;;  %v589_v13 = vsel %vm587_vm3, %v577_v18, 2102212464  ;;  %v592_v14 = vsel %vm584_vm2, %v571_v5, %v574_v6  ;;  %v596_v15 = vsel %vm584_vm2, %v574_v6, %v577_v18 }
  0xae   : > { %535 = vst.msk [vmem:[#allocation2 + $0xb8] sm:$0xff] %vm413_vm0, %v3179_v4  ;;  %v590_v19 = vsel %vm586_vm5, %v574_v6, %v589_v13  ;;  %v593_v20 = vsel %vm587_vm3, %v580_v10, 920167782  ;;  %v597_v21 = vsel %vm587_vm3, %v583_v26, 1326507024  ;;  %v668_v31 = vshrl.u32 %v667_v24, 5 }
  0xaf   : > { %v594_v22 = vsel %vm586_vm5, %v577_v18, %v593_v20  ;;  %v598_v23 = vsel %vm586_vm5, %v580_v10, %v597_v21  ;;  %v591_v27 = vsel %vm585_vm4, %v588_v12, %v590_v19  ;;  %v669_v37 = vand.u32 31, %v667_v24 }
  0xb0   : > { %v595_v29 = vsel %vm585_vm4, %v592_v14, %v594_v22  ;;  %v599_v30 = vsel %vm585_vm4, %v596_v15, %v598_v23  ;;  %v607_v39 = vmul.u32 %v3673_v43, %v591_v27  ;;  %vm687_vm7 = vcmp.lt.s32.totalorder %v668_v31, 1 }
  0xb1   : > { %v3702_v32 = vmul.u32.u64.low %v3673_v43, %v599_v30  ;;  %v3703_v34 = vmul.u32.u64.high %v3673_v43, %v599_v30, %v3702_v32  ;;  %v3706_v35 = vmul.u32.u64.low %v3673_v43, %v595_v29  ;;  %v3707_v36 = vmul.u32.u64.high %v3673_v43, %v595_v29, %v3706_v35 }
  0xb2   : > { %vm690_vm8 = vcmp.lt.s32.totalorder %v668_v31, 4  ;;  %v670_v41 = vsub.s32 32, %v669_v37  ;;  %v672_v42 = vshll.u32 %v4939_v46, %v669_v37  ;;  %v675_v44 = vshll.u32 %v4930_v48, %v669_v37 }
  0xb3   : > { %v678_v45 = vshll.u32 %v4932_v49, %v669_v37  ;;  %vm609_vm9 = vc.u32 %v3703_v34, %v3706_v35  ;;  %v610_v47 = vadd.s32 1, %v3707_v36  ;;  %v681_v8 = vshll.u32 %v4937_v16, %v669_v37 }
  0xb4   : > { %v2829_v50 = vadd.s32 4294967169, %v762_v25  ;;  %v671_v43 = vshrl.u32 %v4939_v46, %v670_v41  ;;  %v673_v51 = vshrl.u32 %v4930_v48, %v670_v41  ;;  %v676_v52 = vshrl.u32 %v4932_v49, %v670_v41 }
  0xb5   : > { %v679_v54 = vshrl.u32 %v4937_v16, %v670_v41  ;;  %v611_v55 = vsel %vm609_vm9, %v610_v47, %v3707_v36  ;;  %v682_v56 = vshrl.u32 %v4943_v53, %v670_v41  ;;  %v684_v57 = vshll.u32 %v4943_v53, %v669_v37 }
  0xb6   : > { %v685_v58 = vshrl.u32 %v4935_v62, %v670_v41  ;;  %v612_v59 = vadd.s32 %v611_v55, %v607_v39  ;;  %v674_v17 = vor.u32 %v673_v51, %v672_v42  ;;  %v677_v60 = vor.u32 %v676_v52, %v675_v44 }
  0xb7   : > { %v680_v61 = vor.u32 %v679_v54, %v678_v45  ;;  %v683_v3 = vor.u32 %v682_v56, %v681_v8  ;;  %vm689_vm10 = vcmp.lt.s32.totalorder %v668_v31, 3  ;;  %v768_v5 = vadd.s32 1, %v2829_v50 }
  0xb8   : > { %v686_v4 = vor.u32 %v685_v58, %v684_v57  ;;  %v613_v6 = vadd.s32 536870912, %v612_v59  ;;  %vm688_vm11 = vcmp.lt.s32.totalorder %v668_v31, 2  ;;  %v695_v9 = vsel %vm687_vm7, %v674_v17, %v677_v60 }
  0xb9   : > { %v692_v18 = vsel %vm690_vm8, %v680_v61, 2102212464  ;;  %v691_v10 = vsel %vm687_vm7, %v671_v43, %v674_v17  ;;  %v696_v26 = vsel %vm690_vm8, %v683_v3, 920167782  ;;  %v699_v12 = vsel %vm687_vm7, %v677_v60, %v680_v61 }
  0xba   : > { %v700_v13 = vsel %vm690_vm8, %v686_v4, 1326507024  ;;  %v3735_v14 = vshrl.u32 %v613_v6, 30  ;;  %v693_v15 = vsel %vm689_vm10, %v677_v60, %v692_v18  ;;  %v697_v19 = vsel %vm689_vm10, %v680_v61, %v696_v26 }
  0xbb   : > { %v701_v20 = vsel %vm689_vm10, %v683_v3, %v700_v13  ;;  %v698_v21 = vsel %vm688_vm11, %v695_v9, %v697_v19  ;;  %vm769_vm12 = vcmp.gt.s32.totalorder %v768_v5, 0  ;;  %v694_v27 = vsel %vm688_vm11, %v691_v10, %v693_v15 }
  0xbc   : > { %v702_v22 = vsel %vm688_vm11, %v699_v12, %v701_v20  ;;  %v615_v23 = vshll.u32 %v3735_v14, 30  ;;  %v3746_v29 = vmul.u32.u64.low %v3712_v40, %v698_v21  ;;  %v3747_v30 = vmul.u32.u64.high %v3712_v40, %v698_v21, %v3746_v29 }
  0xbd   : > { %v3741_v24 = vmul.u32.u64.low %v3712_v40, %v702_v22  ;;  %v3742_v25 = vmul.u32.u64.high %v3712_v40, %v702_v22, %v3741_v24  ;;  %v770_v32 = vsel %vm769_vm12, %v768_v5, 0  ;;  %v765_v37 = vand.u32 8388607, %v758_v38 }
  0xbe   : > { %v616_v36 = vsub.s32 %v612_v59, %v615_v23  ;;  %v772_v39 = vand.u32 31, %v770_v32  ;;  %v710_v42 = vmul.u32 %v3712_v40, %v694_v27  ;;  %v713_v31 = vadd.s32 1, %v3747_v30  ;;  %v3786_v23 = vld [vmem:[#allocation14 + $0x58] sm:$0xff] }
  0xbf   : > { %vm712_vm13 = vc.u32 %v3742_v25, %v3746_v29  ;;  %v766_v47 = vor.u32 8388608, %v765_v37  ;;  %v3756_v8 = vshrl.u32 %v770_v32, 5  ;;  %v608_v58 = vadd.s32 %v3706_v35, %v3703_v34 }
  0xc0   : > { %v618_v41 = vsub.s32 0, %v616_v36  ;;  %v773_v44 = vsub.s32 32, %v772_v39  ;;  %v775_v50 = vshll.u32 %v4939_v46, %v772_v39  ;;  %v714_v43 = vsel %vm712_vm13, %v713_v31, %v3747_v30 }
  0xc1   : > { %v778_v52 = vshll.u32 %v4930_v48, %v772_v39  ;;  %v715_v55 = vadd.s32 %v714_v43, %v710_v42  ;;  %v781_v56 = vshll.u32 %v4932_v49, %v772_v39  ;;  %v784_v59 = vshll.u32 %v4937_v16, %v772_v39 }
  0xc2   : > { %v2822_v45 = vmin.u32 %v618_v41, %v616_v36  ;;  %v776_v51 = vshrl.u32 %v4930_v48, %v773_v44  ;;  %v779_v40 = vshrl.u32 %v4932_v49, %v773_v44  ;;  %v782_v57 = vshrl.u32 %v4937_v16, %v773_v44 }
  0xc3   : > { %v785_v17 = vshrl.u32 %v4943_v53, %v773_v44  ;;  %v716_v61 = vadd.s32 536870912, %v715_v55  ;;  %v787_v3 = vshll.u32 %v4943_v53, %v772_v39  ;;  %v3770_v4 = vshll.u32 %v766_v47, 8 }
  0xc4   : > { %v620_v54 = vclz %v2822_v45  ;;  %v777_v5 = vor.u32 %v776_v51, %v775_v50  ;;  %v780_v6 = vor.u32 %v779_v40, %v778_v52  ;;  %v788_v9 = vshrl.u32 %v4935_v62, %v773_v44 }
  0xc5   : > { %v786_v18 = vor.u32 %v785_v17, %v784_v59  ;;  %v3774_v10 = vshrl.u32 %v716_v61, 30  ;;  %v783_v34 = vor.u32 %v782_v57, %v781_v56  ;;  %vm793_vm1 = vcmp.lt.s32.totalorder %v3756_v8, 4 }
  0xc6   : > { %v2823_v60 = vadd.s32 4294967294, %v620_v54  ;;  %v789_v26 = vor.u32 %v788_v9, %v787_v3  ;;  %vm790_vm2 = vcmp.lt.s32.totalorder %v3756_v8, 1  ;;  %vm792_vm3 = vcmp.lt.s32.totalorder %v3756_v8, 3 }
  0xc7   : > { %v718_v19 = vshll.u32 %v3774_v10, 30  ;;  %v774_v20 = vshrl.u32 %v4939_v46, %v773_v44  ;;  %vm791_vm4 = vcmp.lt.s32.totalorder %v3756_v8, 2  ;;  %v795_v21 = vsel %vm793_vm1, %v783_v34, 2102212464 }
  0xc8   : > { %vm2824_vm15 = vcmp.lt.s32.totalorder %v2823_v60, 0  ;;  %v799_v22 = vsel %vm793_vm1, %v786_v18, 920167782  ;;  %v798_v32 = vsel %vm790_vm2, %v777_v5, %v780_v6  ;;  %v802_v39 = vsel %vm790_vm2, %v780_v6, %v783_v34 }
  0xc9   : > { %v623_v35 = vsel %vm2824_vm15, 0, %v2823_v60  ;;  %v3788_v30 = vsub.s32 %v715_v55, %v718_v19  ;;  %v800_v37 = vsel %vm792_vm3, %v783_v34, %v799_v22  ;;  %v803_v41 = vsel %vm793_vm1, %v789_v26, 1326507024 }
  0xca   : > { %v624_v12 = vsub.s32 32, %v623_v35  ;;  %v625_v13 = vshll.u32 %v616_v36, %v623_v35  ;;  %v628_v15 = vsub.s32 4294967266, %v623_v35  ;;  %v638_v36 = vsub.s32 4, %v3735_v14 }
  0xcb   : > { %v721_v44 = vsub.s32 0, %v3788_v30  ;;  %v864_v45 = vand.u32 2139095040, %v3786_v23  ;;  %v794_v47 = vsel %vm790_vm2, %v774_v20, %v777_v5  ;;  %v796_v50 = vsel %vm792_vm3, %v780_v6, %v795_v21 }
  0xcc   : > { %v626_v24 = vshrl.u32 %v608_v58, %v624_v12  ;;  %v629_v27 = vadd.s32 127, %v628_v15  ;;  %v801_v43 = vsel %vm791_vm4, %v798_v32, %v800_v37  ;;  %v804_v51 = vsel %vm792_vm3, %v786_v18, %v803_v41 }
  0xcd   : > { %v2826_v54 = vmin.u32 %v721_v44, %v3788_v30  ;;  %v805_v55 = vsel %vm791_vm4, %v802_v39, %v804_v51  ;;  %vm349_vm5 = vcmp.ne.f32.partialorder %v3573_v0, 0.0  ;;  %vm3815_vm6 = vcmp.le.f32.partialorder %v552_v11, 0.7853982 }
  0xce   : > { %v627_v42 = vor.u32 %v626_v24, %v625_v13  ;;  %v630_v31 = vshll.u32 %v629_v27, 23  ;;  %v639_v57 = vsel %vm554_vm14, %v638_v36, %v3735_v14  ;;  %v797_v61 = vsel %vm791_vm4, %v794_v47, %v796_v50  ;;  %v3872_v47 = vld [vmem:[#allocation14 + $0x60] sm:$0xff] }
  0xcf   : > { %v723_v59 = vclz %v2826_v54  ;;  %v3823_v17 = vmul.u32.u64.low %v3770_v4, %v805_v55  ;;  %v3824_v60 = vmul.u32.u64.high %v3770_v4, %v805_v55, %v3823_v17  ;;  %v865_v11 = vshrl.u32 %v864_v45, 23 }
  0xd0   : > { %v631_v52 = vor.u32 4788187, %v630_v31  ;;  %v634_v40 = vcvt.s32.f32 %v627_v42  ;;  %v3829_v3 = vmul.u32.u64.low %v3770_v4, %v801_v43  ;;  %v3830_v5 = vmul.u32.u64.high %v3770_v4, %v801_v43, %v3829_v3 }
  0xd1   : > { %v3835_v18 = vsel %vm3815_vm6, 0, %v639_v57  ;;  %vm657_vm7 = vcmp.lt.s32.totalorder %v3658_v28, 0  ;;  %v2827_v14 = vadd.s32 4294967294, %v723_v59  ;;  %v711_v8 = vadd.s32 %v3746_v29, %v3742_v25 }
  0xd2   : > { %v632_v58 = vand.u32 2147483647, %v631_v52  ;;  %v3839_v9 = vand.u32 3, %v3835_v18  ;;  %v861_v34 = vand.u32 2147483647, %v3786_v23  ;;  %v2833_v35 = vadd.s32 4294967169, %v865_v11 }
  0xd3   : > { %vm2828_vm8 = vcmp.lt.s32.totalorder %v2827_v14, 0  ;;  %v813_v12 = vmul.u32 %v3770_v4, %v797_v61  ;;  %vm815_vm9 = vc.u32 %v3824_v60, %v3829_v3  ;;  %v741_v15 = vsub.s32 4, %v3774_v10 }
  0xd4   : > { %v635_v6 = vmul.f32 %v634_v40, %v632_v58  ;;  %v726_v13 = vsel %vm2828_vm8, 0, %v2827_v14  ;;  %v816_v19 = vadd.s32 1, %v3830_v5  ;;  %v871_v20 = vadd.s32 1, %v2833_v35 }
  0xd5   : > { %v727_v25 = vsub.s32 32, %v726_v13  ;;  %v728_v29 = vshll.u32 %v3788_v30, %v726_v13  ;;  %v731_v22 = vsub.s32 4294967266, %v726_v13  ;;  %v868_v27 = vand.u32 8388607, %v861_v34 }
  0xd6   : > { %v636_v26 = vxor.u32 2147483648, %v635_v6  ;;  %v817_v24 = vsel %vm815_vm9, %v816_v19, %v3830_v5  ;;  %vm872_vm10 = vcmp.gt.s32.totalorder %v871_v20, 0  ;;  %v3861_v39 = vsel %vm349_vm5, 1.0, %v4934_v7 }
  0xd7   : > { %v729_v32 = vshrl.u32 %v711_v8, %v727_v25  ;;  %v732_v36 = vadd.s32 127, %v731_v22  ;;  %v818_v37 = vadd.s32 %v817_v24, %v813_v12  ;;  %v742_v30 = vsel %vm657_vm7, %v741_v15, %v3774_v10 }
  0xd8   : > { %v637_v21 = vsel %vm554_vm14, %v636_v26, %v635_v6  ;;  %v873_v41 = vsel %vm872_vm10, %v871_v20, 0  ;;  %vm3868_vm11 = vcmp.le.f32.partialorder %v655_v33, 0.7853982  ;;  %vm647_vm12 = vcmp.eq.s32.totalorder %v3839_v9, 0 }
  0xd9   : > { %v640_v4 = vsel %vm3815_vm6, %v3648_v63, %v637_v21  ;;  %v730_v31 = vor.u32 %v729_v32, %v728_v29  ;;  %v733_v44 = vshll.u32 %v732_v36, 23  ;;  %v819_v45 = vadd.s32 536870912, %v818_v37 }
  0xda   : > { %3180 = vcosq.f32 %v640_v4  ;;  %vm650_vm13 = vcmp.eq.s32.totalorder %v3839_v9, 2  ;;  %v869_v0 = vor.u32 8388608, %v868_v27  ;;  %v875_v50 = vand.u32 31, %v873_v41 }
  0xdb   : > { %3182 = vsinq.f32 %v640_v4  ;;  %vm646_vm14 = vcmp.lt.s32.totalorder %v3839_v9, 2  ;;  %v734_v10 = vor.u32 4788187, %v733_v44  ;;  %v737_v43 = vcvt.s32.f32 %v730_v31 }
  0xdc   : > { %v3879_v33 = vsel %vm3868_vm11, 0, %v742_v30  ;;  %v3881_v51 = vshrl.u32 %v819_v45, 30  ;;  %vm644_vm15 = vweird.f32 %v3648_v63  ;;  %v3887_v40 = vshrl.u32 %v873_v41, 5 }
  0xdd   : > { %v3885_v52 = vand.u32 3, %v3879_v33  ;;  %v876_v54 = vsub.s32 32, %v875_v50  ;;  %v967_v55 = vand.u32 2139095040, %v3872_v47  ;;  %v735_v56 = vand.u32 2147483647, %v734_v10 }
  0xde   : > { %v821_v57 = vshll.u32 %v3881_v51, 30  ;;  %v878_v58 = vshll.u32 %v4939_v46, %v875_v50  ;;  %v964_v59 = vand.u32 2147483647, %v3872_v47  ;;  %v881_v61 = vshll.u32 %v4930_v48, %v875_v50 }
  0xdf   : > { %v879_v17 = vshrl.u32 %v4930_v48, %v876_v54  ;;  %v882_v5 = vshrl.u32 %v4932_v49, %v876_v54  ;;  %v3896_v11 = vshll.u32 %v869_v0, 8  ;;  %v738_v6 = vmul.f32 %v737_v43, %v735_v56 }
  0xe0   : > { %v3898_v14 = vsub.s32 %v818_v37, %v821_v57  ;;  %v884_v8 = vshll.u32 %v4932_v49, %v875_v50  ;;  %v885_v35 = vshrl.u32 %v4937_v16, %v876_v54  ;;  %v887_v26 = vshll.u32 %v4937_v16, %v875_v50 }
  0xe1   : > { %v888_v12 = vshrl.u32 %v4943_v53, %v876_v54  ;;  %vm893_vm1 = vcmp.lt.s32.totalorder %v3887_v40, 1  ;;  %v968_v13 = vshrl.u32 %v967_v55, 23  ;;  %v739_v19 = vxor.u32 2147483648, %v738_v6 }
  0xe2   : > { %v824_v20 = vsub.s32 0, %v3898_v14  ;;  %v877_v21 = vshrl.u32 %v4939_v46, %v876_v54  ;;  %v880_v25 = vor.u32 %v879_v17, %v878_v58  ;;  %v883_v4 = vor.u32 %v882_v5, %v881_v61 }
  0xe3   : > { %v890_v24 = vshll.u32 %v4943_v53, %v875_v50  ;;  %v891_v27 = vshrl.u32 %v4935_v62, %v876_v54  ;;  %v740_v36 = vsel %vm657_vm7, %v739_v19, %v738_v6  ;;  %v886_v30 = vor.u32 %v885_v35, %v884_v8 }
  0xe4   : > { %v3905_v15 = vpop.eup %3180  ;;  %v2830_v37 = vmin.u32 %v824_v20, %v3898_v14  ;;  %v743_v31 = vsel %vm3868_vm11, %v3658_v28, %v740_v36  ;;  %v889_v44 = vor.u32 %v888_v12, %v887_v26  ;;  %vm894_vm2 = vcmp.lt.s32.totalorder %v3887_v40, 2 }
  0xe5   : > { %v3909_v29 = vpop.eup %3182  ;;  %v4923_v22 = vxor.u32 2147483648, %v3905_v15  ;;  %3184 = vcosq.f32 %v743_v31  ;;  %v892_v50 = vor.u32 %v891_v27, %v890_v24  ;;  %vm895_vm3 = vcmp.lt.s32.totalorder %v3887_v40, 3 }
  0xe6   : > { %v4924_v32 = vxor.u32 2147483648, %v3909_v29  ;;  %v826_v0 = vclz %v2830_v37  ;;  %3186 = vsinq.f32 %v743_v31  ;;  %vm896_vm4 = vcmp.lt.s32.totalorder %v3887_v40, 4 }
  0xe7   : > { %v652_v41 = vsel %vm650_vm13, %v4923_v22, %v3909_v29  ;;  %v897_v54 = vsel %vm893_vm1, %v877_v21, %v880_v25  ;;  %v898_v55 = vsel %vm896_vm4, %v886_v30, 2102212464  ;;  %vm350_vm5 = vcmp.ne.f32.partialorder %v3575_v1, 0.0 }
  0xe8   : > { %v649_v45 = vsel %vm647_vm12, %v3905_v15, %v4924_v32  ;;  %v2831_v43 = vadd.s32 4294967294, %v826_v0  ;;  %v899_v56 = vsel %vm895_vm3, %v883_v4, %v898_v55  ;;  %v901_v57 = vsel %vm893_vm1, %v880_v25, %v883_v4 }
  0xe9   : > { %v653_v10 = vsel %vm646_vm14, %v649_v45, %v652_v41  ;;  %v902_v58 = vsel %vm896_vm4, %v889_v44, 920167782  ;;  %v814_v17 = vadd.s32 %v3829_v3, %v3824_v60  ;;  %v905_v5 = vsel %vm893_vm1, %v883_v4, %v886_v30 }
  0xea   : > { %v3938_v42 = vsel %vm644_vm15, nan, %v653_v10  ;;  %vm2832_vm6 = vcmp.lt.s32.totalorder %v2831_v43, 0  ;;  %v903_v61 = vsel %vm895_vm3, %v886_v30, %v902_v58  ;;  %vm747_vm7 = vweird.f32 %v3658_v28 }
  0xeb   : > { %4969 = vst [vmem:[#allocation22_spill] sm:$0xff] %v3938_v42  ;;  %v2208_v9 = vmul.f32 %v3861_v39, %v3938_v42  ;;  %v829_v6 = vsel %vm2832_vm6, 0, %v2831_v43  ;;  %v900_v8 = vsel %vm894_vm2, %v897_v54, %v899_v56  ;;  %v904_v35 = vsel %vm894_vm2, %v901_v57, %v903_v61 }
  0xec   : > { %v906_v60 = vsel %vm896_vm4, %v892_v50, 1326507024  ;;  %v830_v3 = vsub.s32 32, %v829_v6  ;;  %v831_v26 = vshll.u32 %v3898_v14, %v829_v6  ;;  %v834_v12 = vsub.s32 4294967266, %v829_v6 }
  0xed   : > { %2217 = vst.msk [vmem:[#allocation3 + $0x40] sm:$0xff] %vm413_vm0, %v2208_v9  ;;  %v907_v19 = vsel %vm895_vm3, %v889_v44, %v906_v60  ;;  %v3973_v21 = vmul.u32.u64.low %v3896_v11, %v904_v35  ;;  %v3974_v25 = vmul.u32.u64.high %v3896_v11, %v904_v35, %v3973_v21  ;;  %v2837_v4 = vadd.s32 4294967169, %v968_v13 }
  0xee   : > { %v908_v20 = vsel %vm894_vm2, %v905_v5, %v907_v19  ;;  %v832_v24 = vshrl.u32 %v814_v17, %v830_v3  ;;  %v835_v27 = vadd.s32 127, %v834_v12  ;;  %vm749_vm8 = vcmp.lt.s32.totalorder %v3885_v52, 2 }
  0xef   : > { %v3978_v36 = vmul.u32.u64.low %v3896_v11, %v908_v20  ;;  %v3979_v37 = vmul.u32.u64.high %v3896_v11, %v908_v20, %v3978_v36  ;;  %vm760_vm9 = vcmp.lt.s32.totalorder %v3670_v2, 0  ;;  %v844_v14 = vsub.s32 4, %v3881_v51  ;;  %v3984_v30 = vpop.eup %3184 }
  0xf0   : > { %v974_v40 = vadd.s32 1, %v2837_v4  ;;  %vm750_vm10 = vcmp.eq.s32.totalorder %v3885_v52, 0  ;;  %vm753_vm11 = vcmp.eq.s32.totalorder %v3885_v52, 2  ;;  %v833_v13 = vor.u32 %v832_v24, %v831_v26  ;;  %v3988_v31 = vpop.eup %3186 }
  0xf1   : > { %v836_v41 = vshll.u32 %v835_v27, 23  ;;  %v4921_v44 = vxor.u32 2147483648, %v3984_v30  ;;  %v916_v45 = vmul.u32 %v3896_v11, %v900_v8  ;;  %v919_v0 = vadd.s32 1, %v3974_v25  ;;  %v3212_v8 = vld [vmem:[#allocation14 + $0x10] sm:$0xff] }
  0xf2   : > { %vm975_vm12 = vcmp.gt.s32.totalorder %v974_v40, 0  ;;  %v4922_v50 = vxor.u32 2147483648, %v3988_v31  ;;  %v840_v43 = vcvt.s32.f32 %v833_v13  ;;  %v971_v54 = vand.u32 8388607, %v964_v59 }
  0xf3   : > { %v837_v10 = vor.u32 4788187, %v836_v41  ;;  %v755_v55 = vsel %vm753_vm11, %v4921_v44, %v3988_v31  ;;  %v845_v9 = vsel %vm760_vm9, %v844_v14, %v3881_v51  ;;  %vm918_vm13 = vc.u32 %v3979_v37, %v3973_v21 }
  0xf4   : > { %v976_v11 = vsel %vm975_vm12, %v974_v40, 0  ;;  %v4007_v56 = vsel %vm350_vm5, 1.0, %v4934_v7  ;;  %v752_v57 = vsel %vm750_vm10, %v3984_v30, %v4922_v50  ;;  %v920_v17 = vsel %vm918_vm13, %v919_v0, %v3974_v25 }
  0xf5   : > { %v838_v58 = vand.u32 2147483647, %v837_v10  ;;  %v756_v51 = vsel %vm749_vm8, %v752_v57, %v755_v55  ;;  %vm4019_vm14 = vcmp.le.f32.partialorder %v758_v38, 0.7853982  ;;  %v921_v1 = vadd.s32 %v920_v17, %v916_v45 }
  0xf6   : > { %v978_v5 = vand.u32 31, %v976_v11  ;;  %v4025_v6 = vsel %vm747_vm7, nan, %v756_v51  ;;  %vm351_vm1 = vcmp.ne.f32.partialorder %v3212_v8, 0.0  ;;  %v4029_v60 = vsel %vm4019_vm14, 0, %v845_v9 }
  0xf7   : > { %4972 = vst [vmem:[#allocation23_spill] sm:$0xff] %v4025_v6  ;;  %v841_v35 = vmul.f32 %v840_v43, %v838_v58  ;;  %v977_v52 = vshrl.u32 %v976_v11, 5  ;;  %v2209_v38 = vmul.f32 %v4007_v56, %v4025_v6  ;;  %v922_v3 = vadd.s32 536870912, %v921_v1 }
  0xf8   : > { %v972_v26 = vor.u32 8388608, %v971_v54  ;;  %v979_v12 = vsub.s32 32, %v978_v5  ;;  %v981_v20 = vshll.u32 %v4939_v46, %v978_v5  ;;  %v984_v25 = vshll.u32 %v4930_v48, %v978_v5  ;;  %v4052_v54 = vld [vmem:[#allocation14 + $0x68] sm:$0xff] }
  0xf9   : > { %v842_v19 = vxor.u32 2147483648, %v841_v35  ;;  %v990_v4 = vshll.u32 %v4937_v16, %v978_v5  ;;  %2218 = vst.msk [vmem:[#allocation3 + $0x48] sm:$0xff] %vm413_vm0, %v2209_v38  ;;  %v4037_v24 = vshrl.u32 %v922_v3, 30  ;;  %v987_v14 = vshll.u32 %v4932_v49, %v978_v5 }
  0xfa   : > { %v982_v27 = vshrl.u32 %v4930_v48, %v979_v12  ;;  %v985_v36 = vshrl.u32 %v4932_v49, %v979_v12  ;;  %v988_v13 = vshrl.u32 %v4937_v16, %v979_v12  ;;  %v991_v41 = vshrl.u32 %v4943_v53, %v979_v12 }
  0xfb   : > { %v843_v40 = vsel %vm760_vm9, %v842_v19, %v841_v35  ;;  %vm996_vm2 = vcmp.lt.s32.totalorder %v977_v52, 1  ;;  %v924_v0 = vshll.u32 %v4037_v24, 30  ;;  %v980_v10 = vshrl.u32 %v4939_v46, %v979_v12 }
  0xfc   : > { %v846_v45 = vsel %vm4019_vm14, %v3670_v2, %v843_v40  ;;  %v993_v43 = vshll.u32 %v4943_v53, %v978_v5  ;;  %v983_v55 = vor.u32 %v982_v27, %v981_v20  ;;  %v986_v9 = vor.u32 %v985_v36, %v984_v25 }
  0xfd   : > { %3188 = vcosq.f32 %v846_v45  ;;  %v992_v11 = vor.u32 %v991_v41, %v990_v4  ;;  %v4054_v57 = vsub.s32 %v921_v1, %v924_v0  ;;  %v989_v58 = vor.u32 %v988_v13, %v987_v14 }
  0xfe   : > { %3190 = vsinq.f32 %v846_v45  ;;  %v994_v17 = vshrl.u32 %v4935_v62, %v979_v12  ;;  %vm997_vm3 = vcmp.lt.s32.totalorder %v977_v52, 2  ;;  %vm999_vm4 = vcmp.lt.s32.totalorder %v977_v52, 4 }
  0xff   : > { %v1012_v51 = vshll.u32 %v972_v26, 8  ;;  %v1070_v61 = vand.u32 2139095040, %v4052_v54  ;;  %v927_v35 = vsub.s32 0, %v4054_v57  ;;  %vm998_vm5 = vcmp.lt.s32.totalorder %v977_v52, 3 }
 0x100   : > { %v995_v5 = vor.u32 %v994_v17, %v993_v43  ;;  %v1001_v38 = vsel %vm999_vm4, %v989_v58, 2102212464  ;;  %v1000_v3 = vsel %vm996_vm2, %v980_v10, %v983_v55  ;;  %v1004_v1 = vsel %vm996_vm2, %v983_v55, %v986_v9 }
 0x101   : > { %v1002_v19 = vsel %vm998_vm5, %v986_v9, %v1001_v38  ;;  %v1005_v20 = vsel %vm999_vm4, %v992_v11, 920167782  ;;  %v4066_v12 = vsel %vm351_vm1, 1.0, %v4934_v7  ;;  %v851_v26 = vand.u32 3, %v4029_v60 }
 0x102   : > { %v2834_v25 = vmin.u32 %v927_v35, %v4054_v57  ;;  %v1008_v4 = vsel %vm996_vm2, %v986_v9, %v989_v58  ;;  %vm850_vm6 = vweird.f32 %v3670_v2  ;;  %v1006_v27 = vsel %vm998_vm5, %v989_v58, %v1005_v20 }
 0x103   : > { %v1009_v36 = vsel %vm999_vm4, %v995_v5, 1326507024  ;;  %v1071_v14 = vshrl.u32 %v1070_v61, 23  ;;  %v1003_v13 = vsel %vm997_vm3, %v1000_v3, %v1002_v19  ;;  %v1007_v8 = vsel %vm997_vm3, %v1004_v1, %v1006_v27 }
 0x104   : > { %v929_v40 = vclz %v2834_v25  ;;  %v1010_v41 = vsel %vm998_vm5, %v992_v11, %v1009_v36  ;;  %v4078_v0 = vmul.u32.u64.low %v1012_v51, %v1007_v8  ;;  %v4079_v10 = vmul.u32.u64.high %v1012_v51, %v1007_v8, %v4078_v0 }
 0x105   : > { %v1011_v45 = vsel %vm997_vm3, %v1008_v4, %v1010_v41  ;;  %v2841_v43 = vadd.s32 4294967169, %v1071_v14  ;;  %vm852_vm8 = vcmp.lt.s32.totalorder %v851_v26, 2  ;;  %vm853_vm9 = vcmp.eq.s32.totalorder %v851_v26, 0 }
 0x106   : > { %v2835_v55 = vadd.s32 4294967294, %v929_v40  ;;  %v4082_v9 = vmul.u32.u64.low %v1012_v51, %v1011_v45  ;;  %v4083_v58 = vmul.u32.u64.high %v1012_v51, %v1011_v45, %v4082_v9  ;;  %vm856_vm10 = vcmp.eq.s32.totalorder %v851_v26, 2 }
 0x107   : > { %v4085_v17 = vpop.eup %3188  ;;  %v4925_v61 = vand.u32 2147483647, %v4052_v54  ;;  %v1077_v35 = vadd.s32 1, %v2841_v43  ;;  %v917_v5 = vadd.s32 %v3973_v21, %v3979_v37  ;;  %v1019_v38 = vmul.u32 %v1012_v51, %v1003_v13  ;;  %v3213_v43 = vld [vmem:[#allocation14 + $0x18] sm:$0xff] }
 0x108   : > { %v4088_v11 = vpop.eup %3190  ;;  %v4919_v52 = vxor.u32 2147483648, %v4085_v17  ;;  %vm2836_vm11 = vcmp.lt.s32.totalorder %v2835_v55, 0  ;;  %v1022_v1 = vadd.s32 1, %v4079_v10  ;;  %vm1021_vm13 = vc.u32 %v4083_v58, %v4078_v0 }
 0x109   : > { %v4920_v3 = vxor.u32 2147483648, %v4088_v11  ;;  %v932_v19 = vsel %vm2836_vm11, 0, %v2835_v55  ;;  %vm1078_vm12 = vcmp.gt.s32.totalorder %v1077_v35, 0  ;;  %v1074_v37 = vand.u32 8388607, %v4925_v61 }
 0x10a   : > { %v858_v20 = vsel %vm856_vm10, %v4919_v52, %v4088_v11  ;;  %v933_v25 = vsub.s32 32, %v932_v19  ;;  %v934_v4 = vshll.u32 %v4054_v57, %v932_v19  ;;  %v937_v27 = vsub.s32 4294967266, %v932_v19 }
 0x10b   : > { %v855_v21 = vsel %vm853_vm9, %v4085_v17, %v4920_v3  ;;  %v1079_v51 = vsel %vm1078_vm12, %v1077_v35, 0  ;;  %v1023_v13 = vsel %vm1021_vm13, %v1022_v1, %v4079_v10  ;;  %vm863_vm14 = vcmp.lt.s32.totalorder %v3786_v23, 0 }
 0x10c   : > { %v859_v36 = vsel %vm852_vm8, %v855_v21, %v858_v20  ;;  %v935_v14 = vshrl.u32 %v917_v5, %v933_v25  ;;  %v938_v40 = vadd.s32 127, %v937_v27  ;;  %v1024_v8 = vadd.s32 %v1023_v13, %v1019_v38 }
 0x10d   : > { %v4111_v57 = vsel %vm850_vm6, nan, %v859_v36  ;;  %v1081_v41 = vand.u32 31, %v1079_v51  ;;  %vm352_vm1 = vcmp.ne.f32.partialorder %v3213_v43, 0.0  ;;  %vm4118_vm2 = vcmp.le.f32.partialorder %v861_v34, 0.7853982 }
 0x10e   : > { %4973 = vst [vmem:[#allocation24_spill] sm:$0xff] %v4111_v57  ;;  %v2210_v45 = vmul.f32 %v4066_v12, %v4111_v57  ;;  %v936_v10 = vor.u32 %v935_v14, %v934_v4  ;;  %v939_v55 = vshll.u32 %v938_v40, 23  ;;  %v947_v9 = vsub.s32 4, %v4037_v24 }
 0x10f   : > { %v1025_v35 = vadd.s32 536870912, %v1024_v8  ;;  %v1075_v5 = vor.u32 8388608, %v1074_v37  ;;  %v1082_v19 = vsub.s32 32, %v1081_v41  ;;  %v1084_v38 = vshll.u32 %v4939_v46, %v1081_v41 }
 0x110   : > { %2219 = vst.msk [vmem:[#allocation3 + $0x50] sm:$0xff] %vm413_vm0, %v2210_v45  ;;  %v940_v1 = vor.u32 4788187, %v939_v55  ;;  %v943_v20 = vcvt.s32.f32 %v936_v10  ;;  %v1087_v25 = vshll.u32 %v4930_v48, %v1081_v41  ;;  %v1093_v34 = vshll.u32 %v4937_v16, %v1081_v41  ;;  %v3214_v45 = vld [vmem:[#allocation14 + $0x20] sm:$0xff] }
 0x111   : > { %v4127_v27 = vshrl.u32 %v1025_v35, 30  ;;  %v1080_v21 = vshrl.u32 %v1079_v51, 5  ;;  %v1085_v4 = vshrl.u32 %v4930_v48, %v1082_v19  ;;  %v1088_v36 = vshrl.u32 %v4932_v49, %v1082_v19 }
 0x112   : > { %v941_v14 = vand.u32 2147483647, %v940_v1  ;;  %v1090_v37 = vshll.u32 %v4932_v49, %v1081_v41  ;;  %v1091_v40 = vshrl.u32 %v4937_v16, %v1082_v19  ;;  %v1094_v13 = vshrl.u32 %v4943_v53, %v1082_v19 }
 0x113   : > { %vm353_vm3 = vcmp.ne.f32.partialorder %v3214_v45, 0.0  ;;  %v1027_v10 = vshll.u32 %v4127_v27, 30  ;;  %v1086_v55 = vor.u32 %v1085_v4, %v1084_v38  ;;  %v1096_v35 = vshll.u32 %v4943_v53, %v1081_v41 }
 0x114   : > { %v944_v52 = vmul.f32 %v943_v20, %v941_v14  ;;  %v1089_v51 = vor.u32 %v1088_v36, %v1087_v25  ;;  %v1095_v3 = vor.u32 %v1094_v13, %v1093_v34  ;;  %v1097_v44 = vshrl.u32 %v4935_v62, %v1082_v19 }
 0x115   : > { %v948_v1 = vsel %vm863_vm14, %v947_v9, %v4037_v24  ;;  %v4140_v50 = vsub.s32 %v1024_v8, %v1027_v10  ;;  %vm1099_vm4 = vcmp.lt.s32.totalorder %v1080_v21, 1  ;;  %v4142_v22 = vshll.u32 %v1075_v5, 8 }
 0x116   : > { %v945_v32 = vxor.u32 2147483648, %v944_v52  ;;  %v1083_v61 = vshrl.u32 %v4939_v46, %v1082_v19  ;;  %v1092_v38 = vor.u32 %v1091_v40, %v1090_v37  ;;  %vm1100_vm5 = vcmp.lt.s32.totalorder %v1080_v21, 2  ;;  %v4171_v37 = vld [vmem:[#allocation14 + $0x70] sm:$0xff] }
 0x117   : > { %v1030_v41 = vsub.s32 0, %v4140_v50  ;;  %v1098_v20 = vor.u32 %v1097_v44, %v1096_v35  ;;  %vm1101_vm8 = vcmp.lt.s32.totalorder %v1080_v21, 3  ;;  %vm1102_vm9 = vcmp.lt.s32.totalorder %v1080_v21, 4 }
 0x118   : > { %v946_v25 = vsel %vm863_vm14, %v945_v32, %v944_v52  ;;  %v1104_v24 = vsel %vm1102_vm9, %v1092_v38, 2102212464  ;;  %v1107_v8 = vsel %vm1099_vm4, %v1086_v55, %v1089_v51  ;;  %v1108_v9 = vsel %vm1102_vm9, %v1095_v3, 920167782 }
 0x119   : > { %v4153_v5 = vsel %vm352_vm1, 1.0, %v4934_v7  ;;  %v949_v19 = vsel %vm4118_vm2, %v3786_v23, %v946_v25  ;;  %v4160_v44 = vsel %vm353_vm3, 1.0, %v4934_v7  ;;  %v2838_v32 = vmin.u32 %v1030_v41, %v4140_v50 }
 0x11a   : > { %v4165_v52 = vsel %vm4118_vm2, 0, %v948_v1  ;;  %3192 = vcosq.f32 %v949_v19  ;;  %v1103_v34 = vsel %vm1099_vm4, %v1083_v61, %v1086_v55  ;;  %v1109_v43 = vsel %vm1101_vm8, %v1092_v38, %v1108_v9  ;;  %v3215_v55 = vld [vmem:[#allocation14 + $0x28] sm:$0xff] }
 0x11b   : > { %3194 = vsinq.f32 %v949_v19  ;;  %v1032_v4 = vclz %v2838_v32  ;;  %v1105_v36 = vsel %vm1101_vm8, %v1089_v51, %v1104_v24  ;;  %v1110_v14 = vsel %vm1100_vm5, %v1107_v8, %v1109_v43 }
 0x11c   : > { %v1111_v40 = vsel %vm1099_vm4, %v1089_v51, %v1092_v38  ;;  %v1112_v13 = vsel %vm1102_vm9, %v1098_v20, 1326507024  ;;  %v4176_v26 = vmul.u32.u64.low %v4142_v22, %v1110_v14  ;;  %v4177_v45 = vmul.u32.u64.high %v4142_v22, %v1110_v14, %v4176_v26 }
 0x11d   : > { %v954_v61 = vand.u32 3, %v4165_v52  ;;  %vm966_vm10 = vcmp.lt.s32.totalorder %v3872_v47, 0  ;;  %v2839_v10 = vadd.s32 4294967294, %v1032_v4  ;;  %vm354_vm11 = vcmp.ne.f32.partialorder %v3215_v55, 0.0 }
 0x11e   : > { %v1113_v35 = vsel %vm1101_vm8, %v1095_v3, %v1112_v13  ;;  %v1106_v1 = vsel %vm1100_vm5, %v1103_v34, %v1105_v36  ;;  %v4929_v38 = vand.u32 2147483647, %v4171_v37  ;;  %v1173_v41 = vand.u32 2139095040, %v4171_v37  ;;  %v3216_v13 = vld [vmem:[#allocation14 + $0x30] sm:$0xff] }
 0x11f   : > { %v1114_v51 = vsel %vm1100_vm5, %v1111_v40, %v1113_v35  ;;  %vm4942_vm12 = vweird.f32 %v3786_v23  ;;  %v1020_v20 = vadd.s32 %v4078_v0, %v4083_v58  ;;  %vm2840_vm13 = vcmp.lt.s32.totalorder %v2839_v10, 0 }
 0x120   : > { %v4191_v25 = vmul.u32.u64.low %v4142_v22, %v1114_v51  ;;  %v4192_v24 = vmul.u32.u64.high %v4142_v22, %v1114_v51, %v4191_v25  ;;  %vm4196_vm14 = vcmp.le.f32.partialorder %v964_v59, 0.7853982  ;;  %v1035_v21 = vsel %vm2840_vm13, 0, %v2839_v10 }
 0x121   : > { %v4201_v8 = vsel %vm354_vm11, 1.0, %v4934_v7  ;;  %v1125_v9 = vadd.s32 1, %v4177_v45  ;;  %v1174_v19 = vshrl.u32 %v1173_v41, 23  ;;  %v1036_v32 = vsub.s32 32, %v1035_v21  ;;  %v4217_v41 = vld [vmem:[#allocation14 + $0x78] sm:$0xff] }
 0x122   : > { %v1037_v0 = vshll.u32 %v4140_v50, %v1035_v21  ;;  %v1040_v58 = vsub.s32 4294967266, %v1035_v21  ;;  %v1122_v34 = vmul.u32 %v4142_v22, %v1106_v1  ;;  %vm955_vm1 = vcmp.lt.s32.totalorder %v954_v61, 2 }
 0x123   : > { %v1050_v43 = vsub.s32 4, %v4127_v27  ;;  %v2845_v59 = vadd.s32 4294967169, %v1174_v19  ;;  %v1177_v4 = vand.u32 8388607, %v4929_v38  ;;  %vm956_vm2 = vcmp.eq.s32.totalorder %v954_v61, 0 }
 0x124   : > { %v1038_v36 = vshrl.u32 %v1020_v20, %v1036_v32  ;;  %v1041_v14 = vadd.s32 127, %v1040_v58  ;;  %vm1124_vm3 = vc.u32 %v4192_v24, %v4176_v26  ;;  %v4211_v40 = vpop.eup %3192  ;;  %vm959_vm4 = vcmp.eq.s32.totalorder %v954_v61, 2 }
 0x125   : > { %v1126_v50 = vsel %vm1124_vm3, %v1125_v9, %v4177_v45  ;;  %vm355_vm5 = vcmp.ne.f32.partialorder %v3216_v13, 0.0  ;;  %v1180_v22 = vadd.s32 1, %v2845_v59  ;;  %v4214_v10 = vpop.eup %3194  ;;  %v4926_v55 = vxor.u32 2147483648, %v4211_v40 }
 0x126   : > { %v1039_v35 = vor.u32 %v1038_v36, %v1037_v0  ;;  %v1042_v1 = vshll.u32 %v1041_v14, 23  ;;  %v1127_v51 = vadd.s32 %v1126_v50, %v1122_v34  ;;  %v4927_v20 = vxor.u32 2147483648, %v4214_v10 }
 0x127   : > { %v1051_v25 = vsel %vm966_vm10, %v1050_v43, %v4127_v27  ;;  %v1178_v21 = vor.u32 8388608, %v1177_v4  ;;  %vm1181_vm8 = vcmp.gt.s32.totalorder %v1180_v22, 0  ;;  %v961_v45 = vsel %vm959_vm4, %v4926_v55, %v4214_v10 }
 0x128   : > { %v1043_v9 = vor.u32 4788187, %v1042_v1  ;;  %v1046_v19 = vcvt.s32.f32 %v1039_v35  ;;  %v1128_v32 = vadd.s32 536870912, %v1127_v51  ;;  %v958_v0 = vsel %vm956_vm2, %v4211_v40, %v4927_v20 }
 0x129   : > { %v1182_v58 = vsel %vm1181_vm8, %v1180_v22, 0  ;;  %v4928_v34 = vand.u32 2147483647, %v4217_v41  ;;  %v1276_v59 = vand.u32 2139095040, %v4217_v41  ;;  %v962_v27 = vsel %vm955_vm1, %v958_v0, %v961_v45 }
 0x12a   : > { %v1044_v43 = vand.u32 2147483647, %v1043_v9  ;;  %v4235_v4 = vsel %vm4196_vm14, 0, %v1051_v25  ;;  %v4237_v36 = vshrl.u32 %v1128_v32, 30  ;;  %v4241_v14 = vsel %vm4942_vm12, nan, %v962_v27 }
 0x12b   : > { %4978 = vst [vmem:[#allocation25_spill] sm:$0xff] %v4241_v14  ;;  %v4244_v50 = vand.u32 3, %v4235_v4  ;;  %v4248_v22 = vsel %vm355_vm5, 1.0, %v4934_v7  ;;  %v1184_v61 = vand.u32 31, %v1182_v58  ;;  %v2211_v35 = vmul.f32 %v4153_v5, %v4241_v14 }
 0x12c   : > { %4979 = vst [vmem:[#allocation26_spill] sm:$0xff] %v4248_v22  ;;  %v1047_v1 = vmul.f32 %v1046_v19, %v1044_v43  ;;  %v1130_v25 = vshll.u32 %v4237_v36, 30  ;;  %v4253_v45 = vshll.u32 %v1178_v21, 8  ;;  %v4257_v9 = vadd.s32 %v4176_v26, %v4192_v24 }
 0x12d   : > { %v1185_v32 = vsub.s32 32, %v1184_v61  ;;  %v1277_v0 = vshrl.u32 %v1276_v59, 23  ;;  %v4261_v13 = vand.u32 8388607, %v4928_v34  ;;  %2220 = vst.msk [vmem:[#allocation3 + $0x58] sm:$0xff] %vm413_vm0, %v2211_v35  ;;  %v1187_v19 = vshll.u32 %v4939_v46, %v1184_v61 }
 0x12e   : > { %v1048_v27 = vxor.u32 2147483648, %v1047_v1  ;;  %v4264_v55 = vsub.s32 %v1127_v51, %v1130_v25  ;;  %v1190_v21 = vshll.u32 %v4930_v48, %v1184_v61  ;;  %v1193_v24 = vshll.u32 %v4932_v49, %v1184_v61 }
 0x12f   : > { %v1188_v43 = vshrl.u32 %v4930_v48, %v1185_v32  ;;  %v1191_v26 = vshrl.u32 %v4932_v49, %v1185_v32  ;;  %v1196_v59 = vshll.u32 %v4937_v16, %v1184_v61  ;;  %v1183_v34 = vshrl.u32 %v1182_v58, 5 }
 0x130   : > { %v1049_v20 = vsel %vm966_vm10, %v1048_v27, %v1047_v1  ;;  %v1133_v35 = vsub.s32 0, %v4264_v55  ;;  %v1194_v51 = vshrl.u32 %v4937_v16, %v1185_v32  ;;  %v1186_v38 = vshrl.u32 %v4939_v46, %v1185_v32  ;;  %v3217_v27 = vld [vmem:[#allocation14 + $0x38] sm:$0xff] }
 0x131   : > { %v1052_v25 = vsel %vm4196_vm14, %v3872_v47, %v1049_v20  ;;  %v1197_v48 = vshrl.u32 %v4943_v53, %v1185_v32  ;;  %v1281_v49 = vor.u32 8388608, %v4261_v13  ;;  %v1189_v62 = vor.u32 %v1188_v43, %v1187_v19 }
 0x132   : > { %3196 = vcosq.f32 %v1052_v25  ;;  %v2842_v7 = vmin.u32 %v1133_v35, %v4264_v55  ;;  %v1192_v1 = vor.u32 %v1191_v26, %v1190_v21  ;;  %vm356_vm9 = vcmp.ne.f32.partialorder %v3217_v27, 0.0 }
 0x133   : > { %3198 = vsinq.f32 %v1052_v25  ;;  %vm1069_vm10 = vcmp.lt.s32.totalorder %v4052_v54, 0  ;;  %v1195_v58 = vor.u32 %v1194_v51, %v1193_v24  ;;  %v1198_v16 = vor.u32 %v1197_v48, %v1196_v59 }
 0x134   : > { %v2849_v3 = vadd.s32 4294967169, %v1277_v0  ;;  %vm1062_vm11 = vcmp.eq.s32.totalorder %v4244_v50, 2  ;;  %v1135_v20 = vclz %v2842_v7  ;;  %v1199_v46 = vshll.u32 %v4943_v53, %v1184_v61 }
 0x135   : > { %v4980_v22 = vmov 1326507024   ;;  %vm1202_vm13 = vcmp.lt.s32.totalorder %v1183_v34, 1  ;;  %vm1059_vm14 = vcmp.eq.s32.totalorder %v4244_v50, 0  ;;  %vm1203_vm1 = vcmp.lt.s32.totalorder %v1183_v34, 2 }
 0x136   : > { %v1200_v13 = vshrl.u32 %v4980_v22, %v1185_v32  ;;  %vm1204_vm2 = vcmp.lt.s32.totalorder %v1183_v34, 3  ;;  %vm1205_vm3 = vcmp.lt.s32.totalorder %v1183_v34, 4  ;;  %v1206_v19 = vsel %vm1202_vm13, %v1186_v38, %v1189_v62 }
 0x137   : > { %vm1058_vm4 = vcmp.lt.s32.totalorder %v4244_v50, 2  ;;  %v4981_v48 = vand.u32 2147483647, %v4052_v54  ;;  %v2843_v7 = vadd.s32 4294967294, %v1135_v20  ;;  %v1207_v21 = vsel %vm1205_vm3, %v1195_v58, 2102212464 }
 0x138   : > { %v1201_v61 = vor.u32 %v1200_v13, %v1199_v46  ;;  %v1210_v32 = vsel %vm1202_vm13, %v1189_v62, %v1192_v1  ;;  %vm4958_vm8 = vweird.f32 %v3872_v47  ;;  %v1153_v43 = vsub.s32 4, %v4237_v36 }
 0x139   : > { %vm4292_vm5 = vcmp.le.f32.partialorder %v4981_v48, 0.7853982  ;;  %v1208_v26 = vsel %vm1204_vm2, %v1192_v1, %v1207_v21  ;;  %v1211_v38 = vsel %vm1205_vm3, %v1198_v16, 920167782  ;;  %v1214_v24 = vsel %vm1202_vm13, %v1192_v1, %v1195_v58 }
 0x13a   : > { %vm2844_vm12 = vcmp.lt.s32.totalorder %v2843_v7, 0  ;;  %v1212_v59 = vsel %vm1204_vm2, %v1195_v58, %v1211_v38  ;;  %v1215_v35 = vsel %vm1205_vm3, %v1201_v61, 1326507024  ;;  %v1283_v51 = vadd.s32 1, %v2849_v3 }
 0x13b   : > { %v1138_v25 = vsel %vm2844_vm12, 0, %v2843_v7  ;;  %v1209_v46 = vsel %vm1203_vm1, %v1206_v19, %v1208_v26  ;;  %v1213_v20 = vsel %vm1203_vm1, %v1210_v32, %v1212_v59  ;;  %v1216_v62 = vsel %vm1204_vm2, %v1198_v16, %v1215_v35 }
 0x13c   : > { %v1139_v13 = vsub.s32 32, %v1138_v25  ;;  %v1140_v48 = vshll.u32 %v4264_v55, %v1138_v25  ;;  %v1143_v53 = vsub.s32 4294967266, %v1138_v25  ;;  %v1217_v21 = vsel %vm1203_vm1, %v1214_v24, %v1216_v62  ;;  %v4316_v19 = vpop.eup %3196 }
 0x13d   : > { %v4308_v1 = vmul.u32.u64.low %v4253_v45, %v1217_v21  ;;  %v4309_v14 = vmul.u32.u64.high %v4253_v45, %v1217_v21, %v4308_v1  ;;  %v4312_v58 = vmul.u32.u64.low %v4253_v45, %v1213_v20  ;;  %v4313_v3 = vmul.u32.u64.high %v4253_v45, %v1213_v20, %v4312_v58  ;;  %v4322_v34 = vpop.eup %3198 }
 0x13e   : > { %v1141_v7 = vshrl.u32 %v4257_v9, %v1139_v13  ;;  %v1144_v16 = vadd.s32 127, %v1143_v53  ;;  %v1154_v55 = vsel %vm1069_vm10, %v1153_v43, %v4237_v36  ;;  %vm1284_vm12 = vcmp.gt.s32.totalorder %v1283_v51, 0 }
 0x13f   : > { %v4947_v61 = vxor.u32 2147483648, %v4316_v19  ;;  %v4984_v32 = vmov 0.0   ;;  %v1285_v38 = vsel %vm1284_vm12, %v1283_v51, 0  ;;  %v4329_v24 = vshll.u32 %v1281_v49, 8 }
 0x140   : > { %v4327_v26 = vsel %vm356_vm9, 1.0, %v4984_v32  ;;  %v4948_v59 = vxor.u32 2147483648, %v4322_v34  ;;  %v1142_v9 = vor.u32 %v1141_v7, %v1140_v48  ;;  %v1145_v53 = vshll.u32 %v1144_v16, 23 }
 0x141   : > { %4985 = vst [vmem:[#allocation27_spill] sm:$0xff] %v4327_v26  ;;  %v1225_v35 = vmul.u32 %v4253_v45, %v1209_v46  ;;  %v1064_v36 = vsel %vm1062_vm11, %v4947_v61, %v4322_v34  ;;  %v4340_v27 = vsel %vm4292_vm5, 0, %v1154_v55  ;;  %vm1227_vm9 = vc.u32 %v4309_v14, %v4312_v58 }
 0x142   : > { %v1228_v49 = vadd.s32 1, %v4313_v3  ;;  %v1061_v45 = vsel %vm1059_vm14, %v4316_v19, %v4948_v59  ;;  %v1146_v43 = vor.u32 4788187, %v1145_v53  ;;  %v1149_v51 = vcvt.s32.f32 %v1142_v9 }
 0x143   : > { %v1287_v25 = vand.u32 31, %v1285_v38  ;;  %v1065_v46 = vsel %vm1058_vm4, %v1061_v45, %v1064_v36  ;;  %v4353_v20 = vand.u32 3, %v4340_v27  ;;  %v4356_v13 = vshrl.u32 %v1285_v38, 5 }
 0x144   : > { %v1229_v62 = vsel %vm1227_vm9, %v1228_v49, %v4313_v3  ;;  %v4360_v48 = vsel %vm4958_vm8, nan, %v1065_v46  ;;  %v1147_v21 = vand.u32 2147483647, %v1146_v43  ;;  %v4987_v55 = vmov 683565275  }
 0x145   : > { %4986 = vst [vmem:[#allocation28_spill] sm:$0xff] %v4360_v48  ;;  %v1230_v1 = vadd.s32 %v1229_v62, %v1225_v35  ;;  %v1288_v7 = vsub.s32 32, %v1287_v25  ;;  %v2212_v16 = vmul.f32 %v4160_v44, %v4360_v48  ;;  %v1290_v50 = vshll.u32 %v4987_v55, %v1287_v25 }
 0x146   : > { %v4988_v32 = vmov 2475754826   ;;  %v1469_v53 = vadd.s32 3, %v3835_v18  ;;  %v1150_v36 = vmul.f32 %v1149_v51, %v1147_v21  ;;  %v4989_v49 = vmov 2131351028  }
 0x147   : > { %v1293_v9 = vshll.u32 %v4988_v32, %v1287_v25  ;;  %v1231_v3 = vadd.s32 536870912, %v1230_v1  ;;  %v1291_v38 = vshrl.u32 %v4988_v32, %v1288_v7  ;;  %v1296_v45 = vshll.u32 %v4989_v49, %v1287_v25  ;;  %2221 = vst.msk [vmem:[#allocation3 + $0x60] sm:$0xff] %vm413_vm0, %v2212_v16 }
 0x148   : > { %vm1172_vm11 = vcmp.lt.s32.totalorder %v4171_v37, 0  ;;  %v1294_v35 = vshrl.u32 %v4989_v49, %v1288_v7  ;;  %v4990_v43 = vmov 2102212464   ;;  %v4991_v61 = vmov 920167782  }
 0x149   : > { %v1297_v46 = vshrl.u32 %v4990_v43, %v1288_v7  ;;  %v1299_v62 = vshll.u32 %v4990_v43, %v1287_v25  ;;  %v1300_v59 = vshrl.u32 %v4991_v61, %v1288_v7  ;;  %v1151_v26 = vxor.u32 2147483648, %v1150_v36 }
 0x14a   : > { %v1232_v18 = vshrl.u32 %v1231_v3, 30  ;;  %v1302_v51 = vshll.u32 %v4991_v61, %v1287_v25  ;;  %vm1305_vm13 = vcmp.lt.s32.totalorder %v4356_v13, 1  ;;  %v1289_v21 = vshrl.u32 %v4987_v55, %v1288_v7 }
 0x14b   : > { %v1292_v32 = vor.u32 %v1291_v38, %v1290_v50  ;;  %v1295_v16 = vor.u32 %v1294_v35, %v1293_v9  ;;  %v1303_v48 = vshrl.u32 %v4980_v22, %v1288_v7  ;;  %v1152_v49 = vsel %vm1069_vm10, %v1151_v26, %v1150_v36 }
 0x14c   : > { %v1233_v57 = vshll.u32 %v1232_v18, 30  ;;  %v1298_v6 = vor.u32 %v1297_v46, %v1296_v45  ;;  %v1301_v43 = vor.u32 %v1300_v59, %v1299_v62  ;;  %v1155_v3 = vsel %vm4292_vm5, %v4052_v54, %v1152_v49 }
 0x14d   : > { %v1256_v42 = vsub.s32 4, %v1232_v18  ;;  %v1304_v61 = vor.u32 %v1303_v48, %v1302_v51  ;;  %vm1308_vm14 = vcmp.lt.s32.totalorder %v4356_v13, 4  ;;  %3200 = vcosq.f32 %v1155_v3 }
 0x14e   : > { %v4385_v25 = vsub.s32 %v1230_v1, %v1233_v57  ;;  %vm1307_vm1 = vcmp.lt.s32.totalorder %v4356_v13, 3  ;;  %v1310_v22 = vsel %vm1308_vm14, %v1298_v6, 2102212464  ;;  %3202 = vsinq.f32 %v1155_v3 }
 0x14f   : > { %v1309_v26 = vsel %vm1305_vm13, %v1289_v21, %v1292_v32  ;;  %v1311_v0 = vsel %vm1307_vm1, %v1295_v16, %v1310_v22  ;;  %v1573_v59 = vadd.s32 3, %v3879_v33  ;;  %vm1306_vm10 = vcmp.lt.s32.totalorder %v4356_v13, 2 }
 0x150   : > { %v1236_v48 = vsub.s32 0, %v4385_v25  ;;  %v1313_v57 = vsel %vm1305_vm13, %v1292_v32, %v1295_v16  ;;  %v1314_v1 = vsel %vm1308_vm14, %v1301_v43, 920167782  ;;  %vm1162_vm2 = vcmp.eq.s32.totalorder %v4353_v20, 0 }
 0x151   : > { %vm1165_vm3 = vcmp.eq.s32.totalorder %v4353_v20, 2  ;;  %v1315_v7 = vsel %vm1307_vm1, %v1298_v6, %v1314_v1  ;;  %v1317_v33 = vsel %vm1305_vm13, %v1295_v16, %v1298_v6  ;;  %v1318_v55 = vsel %vm1308_vm14, %v1304_v61, 1326507024 }
 0x152   : > { %vm1161_vm4 = vcmp.lt.s32.totalorder %v4353_v20, 2  ;;  %v1226_v50 = vadd.s32 %v4312_v58, %v4309_v14  ;;  %v2846_v9 = vmin.u32 %v1236_v48, %v4385_v25  ;;  %v4415_v36 = vsel %vm1172_vm11, %v1256_v42, %v1232_v18 }
 0x153   : > { %v1312_v38 = vsel %vm1306_vm10, %v1309_v26, %v1311_v0  ;;  %vm1159_vm5 = vweird.f32 %v4052_v54  ;;  %v1316_v6 = vsel %vm1306_vm10, %v1313_v57, %v1315_v7  ;;  %v1319_v45 = vsel %vm1307_vm1, %v1301_v43, %v1318_v55  ;;  %v5011_v54 = vld [vmem:[#allocation23_spill] sm:$0xff] }
 0x154   : > { %v1470_v35 = vand.u32 3, %v1469_v53  ;;  %v1574_v46 = vand.u32 3, %v1573_v59  ;;  %v1238_v14 = vclz %v2846_v9  ;;  %v1320_v58 = vsel %vm1306_vm10, %v1317_v33, %v1319_v45 }
 0x155   : > { %v4427_v42 = vmul.u32.u64.low %v4329_v24, %v1316_v6  ;;  %v4428_v62 = vmul.u32.u64.high %v4329_v24, %v1316_v6, %v4427_v42  ;;  %v4432_v18 = vmul.u32.u64.low %v4329_v24, %v1320_v58  ;;  %v4433_v51 = vmul.u32.u64.high %v4329_v24, %v1320_v58, %v4432_v18 }
 0x156   : > { %vm1471_vm12 = vcmp.lt.s32.totalorder %v1470_v35, 2  ;;  %vm1472_vm9 = vcmp.eq.s32.totalorder %v1470_v35, 0  ;;  %v2847_v21 = vadd.s32 4294967294, %v1238_v14  ;;  %v1328_v32 = vmul.u32 %v4329_v24, %v1312_v38 }
 0x157   : > { %v4992_v53 = vxor.u32 2147483648, %v3909_v29  ;;  %vm1475_vm13 = vcmp.eq.s32.totalorder %v1470_v35, 2  ;;  %v4993_v13 = vxor.u32 2147483648, %v3905_v15  ;;  %vm1575_vm14 = vcmp.lt.s32.totalorder %v1574_v46, 2  ;;  %v4442_v43 = vpop.eup %3200 }
 0x158   : > { %vm1576_vm1 = vcmp.eq.s32.totalorder %v1574_v46, 0  ;;  %vm1579_vm10 = vcmp.eq.s32.totalorder %v1574_v46, 2  ;;  %vm2848_vm8 = vcmp.lt.s32.totalorder %v2847_v21, 0  ;;  %v1331_v3 = vadd.s32 1, %v4428_v62  ;;  %v4446_v22 = vpop.eup %3202 }
 0x159   : > { %v1474_v16 = vsel %vm1472_vm9, %v3905_v15, %v4992_v53  ;;  %v1477_v49 = vsel %vm1475_vm13, %v4993_v13, %v3909_v29  ;;  %v1677_v24 = vadd.s32 3, %v4029_v60  ;;  %v1166_v26 = vxor.u32 2147483648, %v4442_v43 }
 0x15a   : > { %v1478_v61 = vsel %vm1471_vm12, %v1474_v16, %v1477_v49  ;;  %v1241_v0 = vsel %vm2848_vm8, 0, %v2847_v21  ;;  %vm1330_vm9 = vc.u32 %v4433_v51, %v4427_v42  ;;  %v4994_v15 = vxor.u32 2147483648, %v3988_v31 }
 0x15b   : > { %v1163_v59 = vxor.u32 2147483648, %v4446_v22  ;;  %v1242_v48 = vsub.s32 32, %v1241_v0  ;;  %v1243_v57 = vshll.u32 %v4385_v25, %v1241_v0  ;;  %v1246_v1 = vsub.s32 4294967266, %v1241_v0 }
 0x15c   : > { %v1578_v29 = vsel %vm1576_vm1, %v3984_v30, %v4994_v15  ;;  %v1167_v60 = vsel %vm1165_vm3, %v1166_v26, %v4446_v22  ;;  %v4995_v7 = vand.u32 2147483647, %v4171_v37  ;;  %v1332_v55 = vsel %vm1330_vm9, %v1331_v3, %v4428_v62 }
 0x15d   : > { %v4470_v9 = vsel %vm644_vm15, nan, %v1478_v61  ;;  %v4998_v25 = vxor.u32 2147483648, %v3984_v30  ;;  %v1164_v6 = vsel %vm1162_vm2, %v4442_v43, %v1163_v59  ;;  %v1244_v45 = vshrl.u32 %v1226_v50, %v1242_v48 }
 0x15e   : > { %vm4463_vm8 = vcmp.le.f32.partialorder %v4995_v7, 0.7853982  ;;  %v1247_v35 = vadd.s32 127, %v1246_v1  ;;  %v1333_v14 = vadd.s32 %v1332_v55, %v1328_v32  ;;  %v1168_v58 = vsel %vm1161_vm4, %v1164_v6, %v1167_v60 }
 0x15f   : > { %v1581_v38 = vsel %vm1579_vm10, %v4998_v25, %v3988_v31  ;;  %v2225_v63 = vmul.f32 %v3861_v39, %v4470_v9  ;;  %v1678_v30 = vand.u32 3, %v1677_v24  ;;  %v4488_v31 = vsel %vm1159_vm5, nan, %v1168_v58 }
 0x160   : > { %v1582_v62 = vsel %vm1575_vm14, %v1578_v29, %v1581_v38  ;;  %v1245_v18 = vor.u32 %v1244_v45, %v1243_v57  ;;  %v1248_v21 = vshll.u32 %v1247_v35, 23  ;;  %v1334_v53 = vadd.s32 536870912, %v1333_v14 }
 0x161   : > { %v2213_v50 = vmul.f32 %v4201_v8, %v4488_v31  ;;  %2234 = vst.msk [vmem:[#allocation4 + $0x40] sm:$0xff] %vm413_vm0, %v2225_v63  ;;  %v4495_v20 = vsel %vm747_vm7, nan, %v1582_v62  ;;  %vm1679_vm15 = vcmp.lt.s32.totalorder %v1678_v30, 2  ;;  %vm1680_vm2 = vcmp.eq.s32.totalorder %v1678_v30, 0 }
 0x162   : > { %v1249_v46 = vor.u32 4788187, %v1248_v21  ;;  %v1252_v32 = vcvt.s32.f32 %v1245_v18  ;;  %v4999_v16 = vand.u32 2147483647, %v4217_v41  ;;  %v1335_v49 = vshrl.u32 %v1334_v53, 30 }
 0x163   : > { %v2226_v3 = vmul.f32 %v4007_v56, %v4495_v20  ;;  %2222 = vst.msk [vmem:[#allocation3 + $0x68] sm:$0xff] %vm413_vm0, %v2213_v50  ;;  %v5002_v28 = vxor.u32 2147483648, %v4088_v11  ;;  %vm1683_vm7 = vcmp.eq.s32.totalorder %v1678_v30, 2  ;;  %v1781_v24 = vadd.s32 3, %v4165_v52 }
 0x164   : > { %vm4499_vm3 = vcmp.le.f32.partialorder %v4999_v16, 0.7853982  ;;  %v1885_v0 = vadd.s32 3, %v4235_v4  ;;  %v1250_v15 = vand.u32 2147483647, %v1249_v46  ;;  %v1336_v29 = vshll.u32 %v1335_v49, 30 }
 0x165   : > { %v1682_v61 = vsel %vm1680_vm2, %v4085_v17, %v5002_v28  ;;  %v1359_v48 = vsub.s32 4, %v1335_v49  ;;  %2235 = vst.msk [vmem:[#allocation4 + $0x48] sm:$0xff] %vm413_vm0, %v2226_v3  ;;  %v5003_v57 = vxor.u32 2147483648, %v4085_v17  ;;  %vm1275_vm4 = vcmp.lt.s32.totalorder %v4217_v41, 0 }
 0x166   : > { %v1782_v7 = vand.u32 3, %v1781_v24  ;;  %v1886_v55 = vand.u32 3, %v1885_v0  ;;  %v1253_v25 = vmul.f32 %v1252_v32, %v1250_v15  ;;  %v1259_v52 = vsel %vm4463_vm8, 0, %v4415_v36 }
 0x167   : > { %v1685_v1 = vsel %vm1683_vm7, %v5003_v57, %v4088_v11  ;;  %v4520_v4 = vsub.s32 %v1333_v14, %v1336_v29  ;;  %v4526_v6 = vand.u32 3, %v1259_v52  ;;  %v1989_v11 = vadd.s32 3, %v4340_v27 }
 0x168   : > { %v1686_v60 = vsel %vm1679_vm15, %v1682_v61, %v1685_v1  ;;  %vm1784_vm12 = vcmp.eq.s32.totalorder %v1782_v7, 0  ;;  %v1254_v45 = vxor.u32 2147483648, %v1253_v25  ;;  %v1360_v36 = vsel %vm1275_vm4, %v1359_v48, %v1335_v49  ;;  %v5010_v48 = vld [vmem:[#allocation22_spill] sm:$0xff] }
 0x169   : > { %v4524_v38 = vsel %vm850_vm6, nan, %v1686_v60  ;;  %v1339_v35 = vsub.s32 0, %v4520_v4  ;;  %vm1783_vm13 = vcmp.lt.s32.totalorder %v1782_v7, 2  ;;  %v5004_v2 = vxor.u32 2147483648, %v4214_v10 }
 0x16a   : > { %v2227_v17 = vmul.f32 %v4066_v12, %v4524_v38  ;;  %vm1787_vm6 = vcmp.eq.s32.totalorder %v1782_v7, 2  ;;  %vm1888_vm14 = vcmp.eq.s32.totalorder %v1886_v55, 0  ;;  %vm1891_vm1 = vcmp.eq.s32.totalorder %v1886_v55, 2 }
 0x16b   : > { %v1786_v14 = vsel %vm1784_vm12, %v4211_v40, %v5004_v2  ;;  %v1255_v58 = vsel %vm1172_vm11, %v1254_v45, %v1253_v25  ;;  %v1329_v27 = vadd.s32 %v4427_v42, %v4433_v51  ;;  %v2850_v63 = vmin.u32 %v1339_v35, %v4520_v4 }
 0x16c   : > { %2236 = vst.msk [vmem:[#allocation4 + $0x50] sm:$0xff] %vm413_vm0, %v2227_v17  ;;  %vm1887_vm10 = vcmp.lt.s32.totalorder %v1886_v55, 2  ;;  %v1258_v62 = vsel %vm4463_vm8, %v4171_v37, %v1255_v58  ;;  %v1362_v30 = vsel %vm4499_vm3, 0, %v1360_v36  ;;  %v5005_v18 = vxor.u32 2147483648, %v4211_v40 }
 0x16d   : > { %v5006_v53 = vxor.u32 2147483648, %v4322_v34  ;;  %3204 = vcosq.f32 %v1258_v62  ;;  %v1341_v42 = vclz %v2850_v63  ;;  %v5007_v46 = vxor.u32 2147483648, %v4316_v19 }
 0x16e   : > { %v1789_v21 = vsel %vm1787_vm6, %v5005_v18, %v4214_v10  ;;  %3206 = vsinq.f32 %v1258_v62  ;;  %vm5008_vm11 = vweird.f32 %v3786_v23  ;;  %v1990_v40 = vand.u32 3, %v1989_v11 }
 0x16f   : > { %v1890_v50 = vsel %vm1888_vm14, %v4316_v19, %v5006_v53  ;;  %v1790_v51 = vsel %vm1783_vm13, %v1786_v14, %v1789_v21  ;;  %v1893_v33 = vsel %vm1891_vm1, %v5007_v46, %v4322_v34  ;;  %v2851_v10 = vadd.s32 4294967294, %v1341_v42 }
 0x170   : > { %v4560_v32 = vsel %vm5008_vm11, nan, %v1790_v51  ;;  %v1894_v16 = vsel %vm1887_vm10, %v1890_v50, %v1893_v33  ;;  %vm5009_vm9 = vweird.f32 %v3872_v47  ;;  %v2093_v28 = vadd.s32 3, %v1259_v52  ;;  %v5012_v52 = vld [vmem:[#allocation24_spill] sm:$0xff] }
 0x171   : > { %v2228_v49 = vmul.f32 %v4153_v5, %v4560_v32  ;;  %v4566_v3 = vsel %vm5009_vm9, nan, %v1894_v16  ;;  %vm1991_vm8 = vcmp.lt.s32.totalorder %v1990_v40, 2  ;;  %vm1992_vm15 = vcmp.eq.s32.totalorder %v1990_v40, 0 }
 0x172   : > { %v2229_v19 = vmul.f32 %v4160_v44, %v4566_v3  ;;  %vm1995_vm2 = vcmp.eq.s32.totalorder %v1990_v40, 2  ;;  %vm1264_vm7 = vcmp.lt.s32.totalorder %v4526_v6, 2  ;;  %vm2852_vm12 = vcmp.lt.s32.totalorder %v2851_v10, 0 }
 0x173   : > { %2237 = vst.msk [vmem:[#allocation4 + $0x58] sm:$0xff] %vm413_vm0, %v2228_v49  ;;  %v1994_v23 = vsel %vm1992_vm15, %v4442_v43, %v1163_v59  ;;  %v1997_v47 = vsel %vm1995_vm2, %v1166_v26, %v4446_v22  ;;  %v2094_v34 = vand.u32 3, %v2093_v28  ;;  %vm1262_vm13 = vweird.f32 %v4171_v37  ;;  %v5013_v49 = vld [vmem:[#allocation25_spill] sm:$0xff] }
 0x174   : > { %vm1265_vm6 = vcmp.eq.s32.totalorder %v4526_v6, 0  ;;  %vm1268_vm14 = vcmp.eq.s32.totalorder %v4526_v6, 2  ;;  %v1344_v61 = vsel %vm2852_vm12, 0, %v2851_v10  ;;  %2238 = vst.msk [vmem:[#allocation4 + $0x60] sm:$0xff] %vm413_vm0, %v2229_v19  ;;  %v1998_v24 = vsel %vm1991_vm8, %v1994_v23, %v1997_v47 }
 0x175   : > { %v1345_v0 = vsub.s32 32, %v1344_v61  ;;  %v1346_v15 = vshll.u32 %v4520_v4, %v1344_v61  ;;  %v1349_v29 = vsub.s32 4294967266, %v1344_v61  ;;  %v4585_v59 = vsel %vm1159_vm5, nan, %v1998_v24  ;;  %v5015_v24 = vld [vmem:[#allocation26_spill] sm:$0xff] }
 0x176   : > { %v4587_v43 = vand.u32 3, %v1362_v30  ;;  %v2230_v22 = vmul.f32 %v4201_v8, %v4585_v59  ;;  %v2197_v26 = vadd.s32 3, %v1362_v30  ;;  %v2242_v57 = vmul.f32 %v5010_v48, %v5010_v48 }
 0x177   : > { %v1347_v1 = vshrl.u32 %v1329_v27, %v1345_v0  ;;  %v1350_v60 = vadd.s32 127, %v1349_v29  ;;  %vm2095_vm1 = vcmp.lt.s32.totalorder %v2094_v34, 2  ;;  %v2250_v7 = vmul.f32 %v4470_v9, %v4470_v9  ;;  %v3205_v11 = vpop.eup %3204 }
 0x178   : > { %2239 = vst.msk [vmem:[#allocation4 + $0x68] sm:$0xff] %vm413_vm0, %v2230_v22  ;;  %v2243_v55 = vmul.f32 %v5011_v54, %v5011_v54  ;;  %v2251_v25 = vmul.f32 %v4495_v20, %v4495_v20  ;;  %v2244_v4 = vmul.f32 %v5012_v52, %v5012_v52  ;;  %v2252_v17 = vmul.f32 %v4524_v38, %v4524_v38  ;;  %v3207_v36 = vpop.eup %3206 }
 0x179   : > { %v1348_v45 = vor.u32 %v1347_v1, %v1346_v15  ;;  %v1351_v35 = vshll.u32 %v1350_v60, 23  ;;  %vm2096_vm5 = vcmp.eq.s32.totalorder %v2094_v34, 0  ;;  %vm2099_vm10 = vcmp.eq.s32.totalorder %v2094_v34, 2  ;;  %v5014_v34 = vld [vmem:[#allocation28_spill] sm:$0xff] }
 0x17a   : > { %v1269_v2 = vxor.u32 2147483648, %v3205_v11  ;;  %v4604_v14 = vand.u32 3, %v2197_v26  ;;  %v4606_v58 = vsub.f32 %v2242_v57, %v2250_v7  ;;  %v4608_v27 = vsub.f32 %v2243_v55, %v2251_v25 }
 0x17b   : > { %v1266_v63 = vxor.u32 2147483648, %v3207_v36  ;;  %v1352_v62 = vor.u32 4788187, %v1351_v35  ;;  %v1355_v30 = vcvt.s32.f32 %v1348_v45  ;;  %v4610_v18 = vsub.f32 %v2244_v4, %v2252_v17 }
 0x17c   : > { %v1270_v21 = vsel %vm1268_vm14, %v1269_v2, %v3207_v36  ;;  %v2101_v53 = vsel %vm2099_vm10, %v1269_v2, %v3207_v36  ;;  %v2282_v50 = vmul.f32 %v3861_v39, %v4606_v58  ;;  %v2283_v42 = vmul.f32 %v4007_v56, %v4608_v27 }
 0x17d   : > { %v1267_v51 = vsel %vm1265_vm6, %v3205_v11, %v1266_v63  ;;  %v1353_v46 = vand.u32 2147483647, %v1352_v62  ;;  %v2098_v33 = vsel %vm2096_vm5, %v3205_v11, %v1266_v63  ;;  %v2284_v16 = vmul.f32 %v4066_v12, %v4610_v18 }
 0x17e   : > { %v1271_v40 = vsel %vm1264_vm7, %v1267_v51, %v1270_v21  ;;  %v2102_v10 = vsel %vm2095_vm1, %v2098_v33, %v2101_v53  ;;  %2291 = vst.msk [vmem:[#allocation3 + $0x80] sm:$0xff] %vm413_vm0, %v2282_v50  ;;  %2292 = vst.msk [vmem:[#allocation3 + $0x88] sm:$0xff] %vm413_vm0, %v2283_v42  ;;  %v2245_v28 = vmul.f32 %v5013_v49, %v5013_v49  ;;  %vm1368_vm11 = vcmp.eq.s32.totalorder %v4587_v43, 0 }
 0x17f   : > { %v2253_v19 = vmul.f32 %v4560_v32, %v4560_v32  ;;  %v4634_v23 = vsel %vm1262_vm13, nan, %v1271_v40  ;;  %v1356_v47 = vmul.f32 %v1355_v30, %v1353_v46  ;;  %v4638_v6 = vsel %vm1262_vm13, nan, %v2102_v10  ;;  %2293 = vst.msk [vmem:[#allocation3 + $0x90] sm:$0xff] %vm413_vm0, %v2284_v16 }
 0x180   : > { %v2246_v61 = vmul.f32 %v5014_v34, %v5014_v34  ;;  %v2214_v0 = vmul.f32 %v5015_v24, %v4634_v23  ;;  %v2231_v15 = vmul.f32 %v5015_v24, %v4638_v6  ;;  %v2254_v22 = vmul.f32 %v4566_v3, %v4566_v3 }
 0x181   : > { %v4647_v29 = vsub.f32 %v2245_v28, %v2253_v19  ;;  %v1357_v26 = vxor.u32 2147483648, %v1356_v47  ;;  %v2247_v37 = vmul.f32 %v4488_v31, %v4488_v31  ;;  %v2255_v57 = vmul.f32 %v4585_v59, %v4585_v59 }
 0x182   : > { %v2248_v1 = vmul.f32 %v4634_v23, %v4634_v23  ;;  %2223 = vst.msk [vmem:[#allocation3 + $0x70] sm:$0xff] %vm413_vm0, %v2214_v0  ;;  %2240 = vst.msk [vmem:[#allocation4 + $0x70] sm:$0xff] %vm413_vm0, %v2231_v15  ;;  %v4661_v7 = vsub.f32 %v2246_v61, %v2254_v22  ;;  %v2256_v55 = vmul.f32 %v4638_v6, %v4638_v6  ;;  %vm2200_vm9 = vcmp.eq.s32.totalorder %v4604_v14, 0 }
 0x183   : > { %v2285_v60 = vmul.f32 %v4153_v5, %v4647_v29  ;;  %v2266_v25 = vmul.f32 %v4470_v9, %v5010_v48  ;;  %v1358_v4 = vsel %vm1275_vm4, %v1357_v26, %v1356_v47  ;;  %v4669_v17 = vsub.f32 %v2247_v37, %v2255_v57 }
 0x184   : > { %v2267_v11 = vmul.f32 %v4495_v20, %v5011_v54  ;;  %v2268_v45 = vmul.f32 %v4524_v38, %v5012_v52  ;;  %v1361_v35 = vsel %vm4499_vm3, %v4217_v41, %v1358_v4  ;;  %v2286_v36 = vmul.f32 %v4160_v44, %v4661_v7 }
 0x185   : > { %2294 = vst.msk [vmem:[#allocation3 + $0x98] sm:$0xff] %vm413_vm0, %v2285_v60  ;;  %v4681_v2 = vsub.f32 %v2248_v1, %v2256_v55  ;;  %v4683_v63 = vadd.f32 %v2266_v25, %v2266_v25  ;;  %3208 = vcosq.f32 %v1361_v35  ;;  %v2287_v62 = vmul.f32 %v4201_v8, %v4669_v17 }
 0x186   : > { %v4687_v30 = vadd.f32 %v2267_v11, %v2267_v11  ;;  %v4689_v21 = vadd.f32 %v2268_v45, %v2268_v45  ;;  %3210 = vsinq.f32 %v1361_v35  ;;  %2295 = vst.msk [vmem:[#allocation3 + $0xa0] sm:$0xff] %vm413_vm0, %v2286_v36  ;;  %v2269_v50 = vmul.f32 %v4560_v32, %v5013_v49 }
 0x187   : > { %v2288_v13 = vmul.f32 %v5015_v24, %v4681_v2  ;;  %v2299_v53 = vmul.f32 %v3861_v39, %v4683_v63  ;;  %vm1371_vm3 = vcmp.eq.s32.totalorder %v4587_v43, 2  ;;  %vm2203_vm4 = vcmp.eq.s32.totalorder %v4604_v14, 2  ;;  %2296 = vst.msk [vmem:[#allocation3 + $0xa8] sm:$0xff] %vm413_vm0, %v2287_v62 }
 0x188   : > { %v2300_v42 = vmul.f32 %v4007_v56, %v4687_v30  ;;  %v2301_v51 = vmul.f32 %v4066_v12, %v4689_v21  ;;  %v2270_v46 = vmul.f32 %v4566_v3, %v5014_v34  ;;  %v2271_v33 = vmul.f32 %v4585_v59, %v4488_v31 }
 0x189   : > { %2297 = vst.msk [vmem:[#allocation3 + $0xb0] sm:$0xff] %vm413_vm0, %v2288_v13  ;;  %2308 = vst.msk [vmem:[#allocation4 + $0x80] sm:$0xff] %vm413_vm0, %v2299_v53  ;;  %v4713_v16 = vadd.f32 %v2269_v50, %v2269_v50  ;;  %v2272_v40 = vmul.f32 %v4638_v6, %v4634_v23  ;;  %v2316_v10 = vmul.f32 %v4606_v58, %v5010_v48  ;;  %vm1367_vm8 = vcmp.lt.s32.totalorder %v4587_v43, 2 }
 0x18a   : > { %v2324_v28 = vmul.f32 %v4683_v63, %v4470_v9  ;;  %vm2199_vm15 = vcmp.lt.s32.totalorder %v4604_v14, 2  ;;  %2309 = vst.msk [vmem:[#allocation4 + $0x88] sm:$0xff] %vm413_vm0, %v2300_v42  ;;  %2310 = vst.msk [vmem:[#allocation4 + $0x90] sm:$0xff] %vm413_vm0, %v2301_v51  ;;  %v4725_v19 = vadd.f32 %v2270_v46, %v2270_v46  ;;  %v4727_v47 = vadd.f32 %v2271_v33, %v2271_v33  ;;  %v5016_v14 = vld [vmem:[#allocation27_spill] sm:$0xff] }
 0x18b   : > { %v2317_v61 = vmul.f32 %v4608_v27, %v5011_v54  ;;  %v2325_v0 = vmul.f32 %v4687_v30, %v4495_v20  ;;  %vm1365_vm2 = vweird.f32 %v4217_v41  ;;  %v2302_v15 = vmul.f32 %v4153_v5, %v4713_v16 }
 0x18c   : > { %v4736_v22 = vadd.f32 %v2272_v40, %v2272_v40  ;;  %v2332_v26 = vsub.f32 %v2316_v10, %v2324_v28  ;;  %v2318_v37 = vmul.f32 %v4610_v18, %v5012_v52  ;;  %v2303_v57 = vmul.f32 %v4160_v44, %v4725_v19 }
 0x18d   : > { %v2304_v1 = vmul.f32 %v4201_v8, %v4727_v47  ;;  %v2333_v60 = vsub.f32 %v2317_v61, %v2325_v0  ;;  %v2326_v55 = vmul.f32 %v4689_v21, %v4524_v38  ;;  %2311 = vst.msk [vmem:[#allocation4 + $0x98] sm:$0xff] %vm413_vm0, %v2302_v15  ;;  %v2319_v11 = vmul.f32 %v4647_v29, %v5013_v49 }
 0x18e   : > { %v2305_v25 = vmul.f32 %v5015_v24, %v4736_v22  ;;  %v2364_v4 = vmul.f32 %v3861_v39, %v2332_v26  ;;  %v2327_v45 = vmul.f32 %v4713_v16, %v4560_v32  ;;  %2312 = vst.msk [vmem:[#allocation4 + $0xa0] sm:$0xff] %vm413_vm0, %v2303_v57  ;;  %v2320_v62 = vmul.f32 %v4661_v7, %v5014_v34 }
 0x18f   : > { %2313 = vst.msk [vmem:[#allocation4 + $0xa8] sm:$0xff] %vm413_vm0, %v2304_v1  ;;  %v2365_v35 = vmul.f32 %v4007_v56, %v2333_v60  ;;  %v2334_v36 = vsub.f32 %v2318_v37, %v2326_v55  ;;  %v2328_v13 = vmul.f32 %v4725_v19, %v4566_v3  ;;  %v2321_v50 = vmul.f32 %v4669_v17, %v4488_v31  ;;  %v3209_v46 = vpop.eup %3208 }
 0x190   : > { %2314 = vst.msk [vmem:[#allocation4 + $0xb0] sm:$0xff] %vm413_vm0, %v2305_v25  ;;  %2373 = vst.msk [vmem:[#allocation3 + $0xc0] sm:$0xff] %vm413_vm0, %v2364_v4  ;;  %v2335_v53 = vsub.f32 %v2319_v11, %v2327_v45  ;;  %v2329_v42 = vmul.f32 %v4727_v47, %v4585_v59  ;;  %v2322_v51 = vmul.f32 %v4681_v2, %v4634_v23  ;;  %v3211_v61 = vpop.eup %3210  ;;  %v1372_v0 = vxor.u32 2147483648, %v3209_v46 }
 0x191   : > { %2374 = vst.msk [vmem:[#allocation3 + $0xc8] sm:$0xff] %vm413_vm0, %v2365_v35  ;;  %v2366_v33 = vmul.f32 %v4066_v12, %v2334_v36  ;;  %v2336_v40 = vsub.f32 %v2320_v62, %v2328_v13  ;;  %v2330_v10 = vmul.f32 %v4736_v22, %v4638_v6  ;;  %v2340_v28 = vmul.f32 %v4683_v63, %v5010_v48 }
 0x192   : > { %v2367_v15 = vmul.f32 %v4153_v5, %v2335_v53  ;;  %v2337_v26 = vsub.f32 %v2321_v50, %v2329_v42  ;;  %v2348_v37 = vmul.f32 %v4606_v58, %v4470_v9  ;;  %v1369_v57 = vxor.u32 2147483648, %v3211_v61 }
 0x193   : > { %2375 = vst.msk [vmem:[#allocation3 + $0xd0] sm:$0xff] %vm413_vm0, %v2366_v33  ;;  %v2368_v1 = vmul.f32 %v4160_v44, %v2336_v40  ;;  %v2338_v60 = vsub.f32 %v2322_v51, %v2330_v10  ;;  %v2341_v55 = vmul.f32 %v4687_v30, %v5011_v54  ;;  %v1373_v48 = vsel %vm1371_vm3, %v1372_v0, %v3211_v61 }
 0x194   : > { %v2205_v63 = vsel %vm2203_vm4, %v1372_v0, %v3211_v61  ;;  %2376 = vst.msk [vmem:[#allocation3 + $0xd8] sm:$0xff] %vm413_vm0, %v2367_v15  ;;  %v2369_v25 = vmul.f32 %v4201_v8, %v2337_v26  ;;  %v2356_v9 = vadd.f32 %v2348_v37, %v2340_v28  ;;  %v1370_v58 = vsel %vm1368_vm11, %v3209_v46, %v1369_v57 }
 0x195   : > { %v2202_v4 = vsel %vm2200_vm9, %v3209_v46, %v1369_v57  ;;  %2377 = vst.msk [vmem:[#allocation3 + $0xe0] sm:$0xff] %vm413_vm0, %v2368_v1  ;;  %v2370_v54 = vmul.f32 %v5015_v24, %v2338_v60  ;;  %v2349_v30 = vmul.f32 %v4608_v27, %v4495_v20  ;;  %v1374_v11 = vsel %vm1367_vm8, %v1370_v58, %v1373_v48 }
 0x196   : > { %v2206_v45 = vsel %vm2199_vm15, %v2202_v4, %v2205_v63  ;;  %2378 = vst.msk [vmem:[#allocation3 + $0xe8] sm:$0xff] %vm413_vm0, %v2369_v25  ;;  %v2381_v35 = vmul.f32 %v3861_v39, %v2356_v9  ;;  %v2342_v36 = vmul.f32 %v4689_v21, %v5012_v52  ;;  %v1375_v62 = vsel %vm1365_vm2, nan, %v1374_v11 }
 0x197   : > { %v2207_v13 = vsel %vm1365_vm2, nan, %v2206_v45  ;;  %2379 = vst.msk [vmem:[#allocation3 + $0xf0] sm:$0xff] %vm413_vm0, %v2370_v54  ;;  %v2357_v20 = vadd.f32 %v2349_v30, %v2341_v55  ;;  %v2350_v43 = vmul.f32 %v4610_v18, %v4524_v38  ;;  %v2215_v27 = vmul.f32 %v5016_v14, %v1375_v62 }
 0x198   : > { %v2232_v53 = vmul.f32 %v5016_v14, %v2207_v13  ;;  %v2249_v39 = vmul.f32 %v1375_v62, %v1375_v62  ;;  %v2257_v50 = vmul.f32 %v2207_v13, %v2207_v13  ;;  %2390 = vst.msk [vmem:[#allocation4 + $0xc0] sm:$0xff] %vm413_vm0, %v2381_v35  ;;  %v2273_v52 = vmul.f32 %v2207_v13, %v1375_v62 }
 0x199   : > { %v2382_v21 = vmul.f32 %v4007_v56, %v2357_v20  ;;  %v2358_v42 = vadd.f32 %v2350_v43, %v2342_v36  ;;  %v2343_v41 = vmul.f32 %v4713_v16, %v5013_v49  ;;  %2224 = vst.msk [vmem:[#allocation3 + $0x78] sm:$0xff] %vm413_vm0, %v2215_v27  ;;  %v2351_v18 = vmul.f32 %v4647_v29, %v4560_v32 }
 0x19a   : > { %2241 = vst.msk [vmem:[#allocation4 + $0x78] sm:$0xff] %vm413_vm0, %v2232_v53  ;;  %v2265_v38 = vsub.f32 %v2249_v39, %v2257_v50  ;;  %v2344_v51 = vmul.f32 %v4725_v19, %v5014_v34  ;;  %v2352_v46 = vmul.f32 %v4661_v7, %v4566_v3  ;;  %v2281_v33 = vadd.f32 %v2273_v52, %v2273_v52 }
 0x19b   : > { %2391 = vst.msk [vmem:[#allocation4 + $0xc8] sm:$0xff] %vm413_vm0, %v2382_v21  ;;  %v2383_v56 = vmul.f32 %v4066_v12, %v2358_v42  ;;  %v2345_v49 = vmul.f32 %v4727_v47, %v4488_v31  ;;  %v2353_v16 = vmul.f32 %v4669_v17, %v4585_v59  ;;  %v2359_v29 = vadd.f32 %v2351_v18, %v2343_v41 }
 0x19c   : > { %v2289_v40 = vmul.f32 %v5016_v14, %v2265_v38  ;;  %v2323_v32 = vmul.f32 %v2265_v38, %v1375_v62  ;;  %v2360_v10 = vadd.f32 %v2352_v46, %v2344_v51  ;;  %v2306_v34 = vmul.f32 %v5016_v14, %v2281_v33 }
 0x19d   : > { %v2331_v19 = vmul.f32 %v2281_v33, %v2207_v13  ;;  %2392 = vst.msk [vmem:[#allocation4 + $0xd0] sm:$0xff] %vm413_vm0, %v2383_v56  ;;  %v2361_v3 = vadd.f32 %v2353_v16, %v2345_v49  ;;  %v2346_v12 = vmul.f32 %v4736_v22, %v4634_v23  ;;  %v2384_v31 = vmul.f32 %v4153_v5, %v2359_v29 }
 0x19e   : > { %2298 = vst.msk [vmem:[#allocation3 + $0xb8] sm:$0xff] %vm413_vm0, %v2289_v40  ;;  %v2385_v59 = vmul.f32 %v4160_v44, %v2360_v10  ;;  %v2354_v7 = vmul.f32 %v4681_v2, %v4638_v6  ;;  %v2347_v17 = vmul.f32 %v2281_v33, %v1375_v62  ;;  %2315 = vst.msk [vmem:[#allocation4 + $0xb8] sm:$0xff] %vm413_vm0, %v2306_v34 }
 0x19f   : > { %v2339_v47 = vsub.f32 %v2323_v32, %v2331_v19  ;;  %v2386_v28 = vmul.f32 %v4201_v8, %v2361_v3  ;;  %v2355_v61 = vmul.f32 %v2265_v38, %v2207_v13  ;;  %2393 = vst.msk [vmem:[#allocation4 + $0xd8] sm:$0xff] %vm413_vm0, %v2384_v31 }
 0x1a0   : > { %2394 = vst.msk [vmem:[#allocation4 + $0xe0] sm:$0xff] %vm413_vm0, %v2385_v59  ;;  %v2362_v23 = vadd.f32 %v2354_v7, %v2346_v12 }
 0x1a1   : > { %v2371_v22 = vmul.f32 %v5016_v14, %v2339_v47  ;;  %2395 = vst.msk [vmem:[#allocation4 + $0xe8] sm:$0xff] %vm413_vm0, %v2386_v28  ;;  %v2363_v5 = vadd.f32 %v2355_v61, %v2347_v17 }
 0x1a2   : > { %v2387_v44 = vmul.f32 %v5015_v24, %v2362_v23 }
 0x1a3   : > { %2380 = vst.msk [vmem:[#allocation3 + $0xf8] sm:$0xff] %vm413_vm0, %v2371_v22  ;;  %v2388_v6 = vmul.f32 %v5016_v14, %v2363_v5 }
 0x1a4   : > { %2396 = vst.msk [vmem:[#allocation4 + $0xf0] sm:$0xff] %vm413_vm0, %v2387_v44 }
 0x1a5   : > { %2397 = vst.msk [vmem:[#allocation4 + $0xf8] sm:$0xff] %vm413_vm0, %v2388_v6 }
 0x1a6 PF: > { %s2885_s27 = sshll.u32 %s3355_s21, 2  ;;  %s4858_s11 = smov 0  }
 0x1a7   : > { %s2399_s8 = scalar_lea.vmem %s4913_s4, %s2885_s27 }
 0x1a8   : > { %v4856_v8 = vld [vmem:[%s2399_s8] sm:$0xf] }
 0x1a9 LB: >> { %v3384_v24 = vmov 0.0   ;;  %vm3385_vm0 = vmmov 0   ;;  %s2407_s21 = sld [smem:[#allocation7 + %s3367_s11]]  ;;  %vm2442_vm7 = vcmask 523264   ;;  %s2888_s12 = sshll.u32 %s3367_s11, 3  ;;  %s3367_s11 = sphi %s4858_s11, %s2406_s11  }
 0x1aa   : >> { %2918 = vmatprep.subr.bf16.mxu0 %v3384_v24  ;;  %2934 = vmatprep.mubr.msk.bf16.mxu0 %vm3385_vm0, %v3384_v24  ;;  %s4867_s13 = sld [smem:[#allocation11 + %s3367_s11]]  ;;  %s2530_s20 = scalar_lea.vmem [#allocation6], %s2888_s12 }
 0x1ab   : >> { %s2419_s30 = sld [smem:[#allocation12 + %s3367_s11]]  ;;  %s2406_s11 = sadd.s32 1, %s3367_s11  }
 0x1ac   : >> { %p2403_p5 = scmp.ge.s32.totalorder %s2406_s11, 12  }
 0x1ad   : > { %vm3387_vm12 = vmmov (%p2403_p5), 0   ;;  %vm2547_vm13 = vcmask (%p2403_p5), 785408   ;;  %vm2640_vm6 = vcmask (%p2403_p5), 517120  }
 0x1af   : >> { %s2886_s14 = sshll.u32 %s2407_s21, 6 }
 0x1b0   : >> { %s2887_s15 = sshll.u32 %s4867_s13, 6  ;;  %s2409_s16 = scalar_lea.vmem [#allocation2], %s2886_s14 }
 0x1b1   : >> { %v2410_v2 = vld [vmem:[%s2409_s16] sm:$0xff]  ;;  %v2411_v0 = vld [vmem:[%s2409_s16 + $0x8] sm:$0xff]  ;;  %s2421_s17 = scalar_lea.vmem [#allocation3], %s2887_s15  ;;  %v2412_v57 = vld [vmem:[%s2409_s16 + $0x10] sm:$0xff]  ;;  %v2456_v30 = vstv %s2419_s30  ;;  %s2447_s19 = scalar_lea.vmem [#allocation4], %s2887_s15 }
 0x1b2   : >> { %v2422_v15 = vld [vmem:[%s2421_s17] sm:$0xff]  ;;  %v2423_v26 = vld [vmem:[%s2421_s17 + $0x8] sm:$0xff]  ;;  %v2413_v1 = vld [vmem:[%s2409_s16 + $0x18] sm:$0xff] }
 0x1b3   : >> { %v2430_v37 = vmul.f32 %v2422_v15, %v2410_v2  ;;  %v2431_v60 = vmul.f32 %v2423_v26, %v2411_v0  ;;  %v2424_v55 = vld [vmem:[%s2421_s17 + $0x10] sm:$0xff]  ;;  %v2425_v48 = vld [vmem:[%s2421_s17 + $0x18] sm:$0xff]  ;;  %v2414_v63 = vld [vmem:[%s2409_s16 + $0x20] sm:$0xff] }
 0x1b4   : >> { %v2432_v25 = vmul.f32 %v2424_v55, %v2412_v57  ;;  %v2433_v9 = vmul.f32 %v2425_v48, %v2413_v1  ;;  %v2415_v58 = vld [vmem:[%s2409_s16 + $0x28] sm:$0xff]  ;;  %v2426_v4 = vld [vmem:[%s2421_s17 + $0x20] sm:$0xff]  ;;  %v2416_v36 = vld [vmem:[%s2409_s16 + $0x30] sm:$0xff]  ;;  %v3386_v48 = vmov (%p2403_p5), 0.0|0.0  }
 0x1b5   : >> { %v2427_v54 = vld [vmem:[%s2421_s17 + $0x28] sm:$0xff]  ;;  %v2438_v11 = vpack.c.bf16 %v2431_v60, %v2430_v37  ;;  %v2434_v45 = vmul.f32 %v2426_v4, %v2414_v63  ;;  %v2417_v62 = vld [vmem:[%s2409_s16 + $0x38] sm:$0xff]  ;;  %v2428_v13 = vld [vmem:[%s2421_s17 + $0x30] sm:$0xff]  ;;  %2989 = vmatprep.subr.bf16.mxu1 (%p2403_p5), %v3386_v48 }
 0x1b6   : >> { %v2435_v35 = vmul.f32 %v2427_v54, %v2415_v58  ;;  %v2439_v20 = vpack.c.bf16 %v2433_v9, %v2432_v25  ;;  %v2429_v43 = vld [vmem:[%s2421_s17 + $0x38] sm:$0xff]  ;;  %v2436_v14 = vmul.f32 %v2428_v13, %v2416_v36  ;;  %v2448_v27 = vld [vmem:[%s2447_s19] sm:$0xff]  ;;  %v2449_v53 = vld [vmem:[%s2447_s19 + $0x8] sm:$0xff]  ;;  %v3388_v9 = vmov (%p2403_p5), 0.0  }
 0x1b7   : >> { %2443 = vst.msk [vmem:[#allocation5] sm:$0xff] %vm2442_vm7, %v2438_v11  ;;  %v2437_v50 = vmul.f32 %v2429_v43, %v2417_v62  ;;  %v2457_v52 = vmul.f32 %v2456_v30, %v2448_v27  ;;  %v2458_v21 = vmul.f32 %v2456_v30, %v2449_v53  ;;  %v2450_v42 = vld [vmem:[%s2447_s19 + $0x10] sm:$0xff]  ;;  %v2451_v41 = vld [vmem:[%s2447_s19 + $0x18] sm:$0xff]  ;;  %v2452_v38 = vld [vmem:[%s2447_s19 + $0x20] sm:$0xff]  ;;  %2965 = vmatprep.mubr.msk.f32.mxu1 (%p2403_p5), %vm3387_vm12, %v3388_v9 }
 0x1b8   : >> { %v2440_v39 = vpack.c.bf16 %v2435_v35, %v2434_v45  ;;  %2444 = vst.msk [vmem:[#allocation5 + $0x8] sm:$0xff] %vm2442_vm7, %v2439_v20  ;;  %v2459_v18 = vmul.f32 %v2456_v30, %v2450_v42  ;;  %v2460_v51 = vmul.f32 %v2456_v30, %v2451_v41  ;;  %v2453_v46 = vld [vmem:[%s2447_s19 + $0x28] sm:$0xff]  ;;  %v2461_v33 = vmul.f32 %v2456_v30, %v2452_v38  ;;  %v2454_v56 = vld [vmem:[%s2447_s19 + $0x30] sm:$0xff]  ;;  %v2455_v49 = vld [vmem:[%s2447_s19 + $0x38] sm:$0xff] }
 0x1b9   : >> { %v2441_v16 = vpack.c.bf16 %v2437_v50, %v2436_v14  ;;  %v2465_v40 = vmul.f32 %v2457_v52, %v2410_v2  ;;  %v2466_v32 = vmul.f32 %v2458_v21, %v2411_v0  ;;  %v2462_v29 = vmul.f32 %v2456_v30, %v2453_v46  ;;  %v2533_v14 = vld [vmem:[#allocation15 + $0x8] sm:$0xff] (%p2403_p5)  ;;  %v2532_v27 = vld [vmem:[#allocation15] sm:$0xff] (%p2403_p5)  ;;  %v2534_v53 = vld [vmem:[#allocation15 + $0x10] sm:$0x3] (%p2403_p5) }
 0x1ba   : >> { %2445 = vst.msk [vmem:[#allocation5 + $0x10] sm:$0xff] %vm2442_vm7, %v2440_v39  ;;  %v2467_v10 = vmul.f32 %v2459_v18, %v2412_v57  ;;  %v2468_v34 = vmul.f32 %v2460_v51, %v2413_v1  ;;  %v2469_v19 = vmul.f32 %v2461_v33, %v2414_v63  ;;  %v2463_v3 = vmul.f32 %v2456_v30, %v2454_v56 }
 0x1bb   : >> { %2446 = vst.msk [vmem:[#allocation5 + $0x18] sm:$0xff] %vm2442_vm7, %v2441_v16  ;;  %v2473_v12 = vpack.c.bf16 %v2466_v32, %v2465_v40  ;;  %v2470_v31 = vmul.f32 %v2462_v29, %v2415_v58  ;;  %v2464_v59 = vmul.f32 %v2456_v30, %v2455_v49 }
 0x1bc   : >> { %v2474_v7 = vpack.c.bf16 %v2468_v34, %v2467_v10  ;;  %v2471_v17 = vmul.f32 %v2463_v3, %v2416_v36 }
 0x1bd   : >> { %2477 = vst.msk [vmem:[#allocation5 + $0x20] sm:$0xff] %vm2442_vm7, %v2473_v12  ;;  %v2475_v47 = vpack.c.bf16 %v2470_v31, %v2469_v19  ;;  %v2472_v28 = vmul.f32 %v2464_v59, %v2417_v62 }
 0x1be   : >> { %v2481_v61 = vld [vmem:[#allocation5] sm:$0xff]  ;;  %2478 = vst.msk [vmem:[#allocation5 + $0x28] sm:$0xff] %vm2442_vm7, %v2474_v7 }
 0x1bf   : >> { %2919 = vmatpush3.bf16.msra.mxu0 %v2481_v61  ;;  %2479 = vst.msk [vmem:[#allocation5 + $0x30] sm:$0xff] %vm2442_vm7, %v2475_v47  ;;  %v2476_v23 = vpack.c.bf16 %v2472_v28, %v2471_v17  ;;  %v2482_v22 = vld [vmem:[#allocation5 + $0x8] sm:$0xff] }
 0x1c0   : >> { %2920 = vmatprep.subr.bf16.mxu0 %v3384_v24 }
 0x1c1   : >> { %2480 = vst.msk [vmem:[#allocation5 + $0x38] sm:$0xff] %vm2442_vm7, %v2476_v23  ;;  %v2483_v5 = vld [vmem:[#allocation5 + $0x10] sm:$0xff] }
 0x1c2   : >> { %v2484_v44 = vld [vmem:[#allocation5 + $0x18] sm:$0xff] }
 0x1c3   : >> { %2921 = vmatpush3.bf16.msra.mxu0 %v2482_v22 }
 0x1c4   : >> { %2922 = vmatprep.subr.bf16.mxu0 %v3384_v24  ;;  %v2485_v6 = vld [vmem:[#allocation5 + $0x20] sm:$0xff] }
 0x1c5   : >> { %v2486_v2 = vld [vmem:[#allocation5 + $0x28] sm:$0xff] }
 0x1c6   : >> { %v2487_v0 = vld [vmem:[#allocation5 + $0x30] sm:$0xff] }
 0x1c7   : >> { %2923 = vmatpush3.bf16.msra.mxu0 %v2483_v5 }
 0x1c8   : >> { %2924 = vmatprep.subr.bf16.mxu0 %v3384_v24  ;;  %v2488_v15 = vld [vmem:[#allocation5 + $0x38] sm:$0xff] }
 0x1cb   : >> { %2925 = vmatpush3.bf16.msra.mxu0 %v2484_v44 }
 0x1cc   : >> { %2926 = vmatprep.subr.bf16.mxu0 %v3384_v24 }
 0x1cf   : >> { %2927 = vmatpush3.bf16.msra.mxu0 %v2485_v6 }
 0x1d0   : >> { %2928 = vmatprep.subr.bf16.mxu0 %v3384_v24 }
 0x1d3   : >> { %2929 = vmatpush3.bf16.msra.mxu0 %v2486_v2 }
 0x1d4   : >> { %2930 = vmatprep.subr.bf16.mxu0 %v3384_v24 }
 0x1d7   : >> { %2931 = vmatpush3.bf16.msra.mxu0 %v2487_v0 }
 0x1d8   : >> { %2932 = vmatprep.subr.bf16.mxu0 %v3384_v24 }
 0x1db   : >> { %2933 = vmatpush3.bf16.msra.mxu0 %v2488_v15 }
 0x1dc   : > { %2971 = vmatprep.subr.bf16.mxu0 (%p2403_p5), %v3386_v48 }
 0x1de   : >> { %2935 = vmatmul.mubr.bf16.vlgmr.msra.gmra.mrb[0].mxu0 %v4856_v8 }
 0x1df   : > { %2962 = vmatprep.mubr.msk.f32.mxu0 (%p2403_p5), %vm3387_vm12, %v3388_v9 }
 0x2ae   : > { %2405 = sbr.rel (!%p2403_p5) target bundleno = 425 (0x1a9), region = 120 }
 0x2b1   : >> { %v2523_v26 = vpop.f32.mrb[0].mxu0 }
 0x2b2   : >> { %2531 = vst.msk [vmem:[%s2530_s20] sm:$0xff] %vm2442_vm7, %v2523_v26  ;;  %v2936_v37 = vpop.f32.mrb[1].mxu0 }
 0x2b3   : >> { %v2526_v57 = vpop.f32.mrb[2].mxu0 }
 0x2b4   : >> { %v2937_v1 = vpop.f32.mrb[3].mxu0 }
 0x2b9   : > { %v2535_v60 = vld [vmem:[#allocation6] sm:$0xff]  ;;  %v2536_v24 = vld [vmem:[#allocation6 + $0x8] sm:$0xff]  ;;  %v2537_v55 = vld [vmem:[#allocation6 + $0x10] sm:$0xff] }
 0x2ba   : > { %v2972_v63 = vpack.c.bf16 %v2536_v24, %v2535_v60  ;;  %v2538_v25 = vld [vmem:[#allocation6 + $0x18] sm:$0xff]  ;;  %v2539_v4 = vld [vmem:[#allocation6 + $0x20] sm:$0xff]  ;;  %v2540_v8 = vld [vmem:[#allocation6 + $0x28] sm:$0xff] }
 0x2bb   : > { %v2975_v58 = vpack.c.bf16 %v2538_v25, %v2537_v55  ;;  %v2978_v54 = vpack.c.bf16 %v2540_v8, %v2539_v4  ;;  %v2541_v30 = vld [vmem:[#allocation6 + $0x30] sm:$0xff]  ;;  %v2542_v11 = vld [vmem:[#allocation6 + $0x38] sm:$0xff]  ;;  %v2543_v35 = vld [vmem:[#allocation6 + $0x40] sm:$0xff] }
 0x2bc   : > { %2995 = vmatpush3.bf16.msra.mxu1 %v2972_v63  ;;  %2973 = vmatpush3.bf16.msra.mxu0 %v2972_v63  ;;  %v2981_v45 = vpack.c.bf16 %v2542_v11, %v2541_v30  ;;  %v2544_v36 = vld [vmem:[#allocation6 + $0x48] sm:$0xff]  ;;  %v2545_v13 = vld [vmem:[#allocation6 + $0x50] sm:$0xff]  ;;  %v2546_v20 = vld [vmem:[#allocation6 + $0x58] sm:$0xff] }
 0x2bd   : > { %2990 = vmatprep.subr.bf16.mxu1 %v3386_v48  ;;  %2974 = vmatprep.subr.bf16.mxu0 %v3386_v48  ;;  %v2984_v62 = vpack.c.bf16 %v2544_v36, %v2543_v35  ;;  %v2987_v43 = vpack.c.bf16 %v2546_v20, %v2545_v13 }
 0x2c0   : > { %2996 = vmatpush3.bf16.msra.mxu1 %v2975_v58  ;;  %2976 = vmatpush3.bf16.msra.mxu0 %v2975_v58 }
 0x2c1   : > { %2991 = vmatprep.subr.bf16.mxu1 %v3386_v48  ;;  %2977 = vmatprep.subr.bf16.mxu0 %v3386_v48 }
 0x2c4   : > { %2997 = vmatpush3.bf16.msra.mxu1 %v2978_v54  ;;  %2979 = vmatpush3.bf16.msra.mxu0 %v2978_v54 }
 0x2c5   : > { %2992 = vmatprep.subr.bf16.mxu1 %v3386_v48  ;;  %2980 = vmatprep.subr.bf16.mxu0 %v3386_v48 }
 0x2c8   : > { %2998 = vmatpush3.bf16.msra.mxu1 %v2981_v45  ;;  %2982 = vmatpush3.bf16.msra.mxu0 %v2981_v45 }
 0x2c9   : > { %2993 = vmatprep.subr.bf16.mxu1 %v3386_v48  ;;  %2983 = vmatprep.subr.bf16.mxu0 %v3386_v48 }
 0x2cc   : > { %2999 = vmatpush3.bf16.msra.mxu1 %v2984_v62  ;;  %2985 = vmatpush3.bf16.msra.mxu0 %v2984_v62 }
 0x2cd   : > { %2994 = vmatprep.subr.bf16.mxu1 %v3386_v48  ;;  %2986 = vmatprep.subr.bf16.mxu0 %v3386_v48 }
 0x2d0   : > { %3000 = vmatpush3.bf16.msra.mxu1 %v2987_v43  ;;  %2988 = vmatpush3.bf16.msra.mxu0 %v2987_v43 }
 0x2d3   : > { %2966 = vmatmul.mubr.msk.f32.vlgmr.msra.gmra.mrb[0].mxu1 %vm2547_vm13, %v2533_v14  ;;  %2963 = vmatmul.mubr.msk.f32.vlgmr.msra.gmra.mrb[0].mxu0 %vm2547_vm13, %v2532_v27 }
 0x2d4   : > { %2968 = vmatprep.mubr.msk.f32.mxu1 %vm3387_vm12, %v3388_v9 }
 0x2d7   : > { %2969 = vmatmul.mubr.msk.f32.gmra.mrb[2].mxu1 %vm2547_vm13, %v2534_v53 }
 0x3a6   : > { %v2628_v39 = vpop.f32.mrb[0].mxu1  ;;  %v2623_v50 = vpop.f32.mrb[0].mxu0 }
 0x3a7   : > { %2639 = vst.msk [vmem:[%s3570_s28 + $0x8] sm:$0xff] %vm2442_vm7, %v2628_v39  ;;  %v2967_v52 = vpop.f32.mrb[1].mxu1  ;;  %2638 = vst.msk [vmem:[%s3570_s28] sm:$0xff] %vm2442_vm7, %v2623_v50  ;;  %v2964_v21 = vpop.f32.mrb[1].mxu0 }
 0x3aa   : > { %v2633_v42 = vpop.f32.mrb[2].mxu1 }
 0x3ab   : > { %2641 = vst.msk [vmem:[%s3570_s28 + $0x10] sm:$0x3] %vm2640_vm6, %v2633_v42  ;;  %v2970_v41 = vpop.f32.mrb[3].mxu1 }
 0x3ac PF: > { %s21_s23 = sadd.s32 1, %s3363_s23   ;;  %s5017_s21 = smov %s3359_s22 }
 0x3ad   : > { %p18_p4 = scmp.ge.s32.totalorder %s21_s23, 4   ;;  %s5018_s22 = smov %s5020_s25 }
 0x3af   :  { %20 = sbr.rel (!%p18_p4) target bundleno = 6 (0x6), region = 131 }
 0x3b6   :  { %2669 = vsyncpa [#allocation8], 1 }
 0x3b7   :  { %2671 = vsyncpa [#allocation8 + $0x1], 1 }
 0x3b8   :  { %2672 = vsyncpa [#allocation16], 1 }
 0x3b9   :  { %2673 = vsyncpa [#allocation9], 1 }
 0x3ba   :  { %2675 = vsyncpa [#allocation9 + $0x1], 1 }
 0x3bb   :  { %2676 = vsyncpa [#allocation10], 1 }
 0x3bc   :  { %2678 = vsyncpa [#allocation10 + $0x1], 1 }
 0x3bd   :  { %2679 = vsyncpa [#allocation13], 1 }

</bundles_post_ra>
